<compile_context>
chip_gen: v7x
topology: tpu7x:2x2x1
jax: 0.10.0
libtpu: 0.0.40
codegen_flags: <defaults>
</compile_context>

<pallas_src>
import functools

import jax
import jax.numpy as jnp
from jax import lax
from jax.experimental import pallas as pl
from jax.experimental.pallas import tpu as pltpu

K1, S1, P1 = 8, 2, 2      # conv1: kernel, stride, padding
K2, P2 = 4, 1             # conv2: kernel, padding (stride = 1)
C1 = 48                   # conv1 out-channels
C1P = 64                  # conv1 out-channels padded (lane-friendly, K2*C1P=256)
C2 = 64                   # conv2 out-channels
NLAM = 8                  # lambdas_in features padded 5 -> 8


# ----------------------------------------------------------------------------
# Kernel: one batch tile (TB samples) per grid step.
# ----------------------------------------------------------------------------
def _model1d_kernel(
    x1f_ref,               # (TB*F, K1*C)  bf16  conv1 im2col in padded frames
    lamin_ref,             # (TB, NLAM)    f32
    dlam_ref,              # (TB, 2)       f32
    mask_ref,              # (TB*F, 1)     f32   0 on frame-pad rows
    pool_ref,              # (TB, Mout)    f32   mean-pool selection matrix
    w1_ref, b1_ref,        # (K1*C, C1P) bf16, (1, C1P) f32
    w2_ref, b2_ref,        # (K2*C1P, C2) bf16, (1, C2) f32
    wl1_ref, bl1_ref,      # (NLAM, 32) bf16, (1, 32) f32
    wl2_ref, bl2_ref,      # (32, 64) bf16, (1, 64) f32
    wf1l_ref, wf1z_ref, bf1_ref,   # (64, 128) bf16 x2, (1, 128) f32
    wf2_ref, bf2_ref,      # (128, 64) bf16, (1, 64) f32
    wf3_ref, bf3_ref,      # (64, 2) bf16, (1, 2) f32
    out1_ref,              # (TB, 2) f32
    out2_ref,              # (TB, 1) f32
    *, Mout,
):
    f32, bf16 = jnp.float32, jnp.bfloat16

    # ---- conv1 (+ReLU) as one flattened (TB*F, 48) @ (48, 64) matmul --------
    h1 = jnp.dot(x1f_ref[...], w1_ref[...], preferred_element_type=f32)
    h1 = jnp.maximum(h1 + b1_ref[...], 0.0) * mask_ref[...]          # (TB*F, C1P)

    # ---- conv2 (+ReLU): in-register im2col -> one (Mout, 256)@(256, 64) -----
    x2 = jnp.concatenate([h1[k:k + Mout, :] for k in range(K2)], axis=-1)
    h2 = jnp.dot(x2.astype(bf16), w2_ref[...], preferred_element_type=f32)
    h2 = jnp.maximum(h2 + b2_ref[...], 0.0)                          # (Mout, C2)

    # ---- adaptive_avg_pool1d(., 1): mean over valid frame rows, as matmul ---
    zs_feat = jnp.dot(pool_ref[...], h2, preferred_element_type=f32)  # (TB, 64)

    # ---- lambdas branch MLP --------------------------------------------------
    l1 = jnp.maximum(
        jnp.dot(lamin_ref[...].astype(bf16), wl1_ref[...],
                preferred_element_type=f32) + bl1_ref[...], 0.0)
    lam_feat = jnp.maximum(
        jnp.dot(l1.astype(bf16), wl2_ref[...],
                preferred_element_type=f32) + bl2_ref[...], 0.0)      # (TB, 64)

    # ---- head MLP (feature concat replaced by split fc1 weights) ------------
    f1 = jnp.maximum(
        jnp.dot(lam_feat.astype(bf16), wf1l_ref[...], preferred_element_type=f32)
        + jnp.dot(zs_feat.astype(bf16), wf1z_ref[...], preferred_element_type=f32)
        + bf1_ref[...], 0.0)
    f2 = jnp.maximum(
        jnp.dot(f1.astype(bf16), wf2_ref[...], preferred_element_type=f32)
        + bf2_ref[...], 0.0)
    out1 = (jnp.dot(f2.astype(bf16), wf3_ref[...], preferred_element_type=f32)
            + bf3_ref[...])

    out1_ref[...] = out1
    out2_ref[...] = jnp.sum(out1 * dlam_ref[...], axis=-1, keepdims=True)


# ----------------------------------------------------------------------------
# Wrapper: one-hot + conv1 im2col (bf16), frame layout, weight prep, pallas_call
# ----------------------------------------------------------------------------
def model1d_forward(params, lambdas, dlambdas, zs, *,
                    n_sites, in_classes, lambda_coeff=1.0, dlambda_coeff=1.0,
                    batch_tile=16):
    f32, bf16 = jnp.float32, jnp.bfloat16
    B = dlambdas.shape[0]
    C = in_classes
    L1 = (n_sites + 2 * P1 - K1) // S1 + 1
    L2 = L1 + 2 * P2 - K2 + 1
    F = L1 + 2 * P2                   # per-sample frame = conv1 out + conv2 pad rows

    TB = batch_tile                   # TB*F multiple of 16 (F odd, TB=16) for bf16 tiles
    Bp = ((B + TB - 1) // TB) * TB    # pad batch to a multiple of TB
    Mout = TB * F - (K2 - 1)          # rows of the flattened conv2 output per tile

    # ---- lambdas_in features -------------------------------------------------
    dc2 = dlambda_coeff ** 2
    dl0 = dlambdas[:, 0:1].astype(f32)
    dl1 = dlambdas[:, 1:2].astype(f32)
    lamin = jnp.concatenate(
        [dc2 * (dl0 ** 2 - 2.0 / 3.0),
         dc2 * (dl0 * dl1),
         dc2 * (dl1 ** 2 - 2.0 / 3.0),
         lambda_coeff * lambdas.astype(f32)], axis=-1)               # (B, 5)
    lamin = jnp.pad(lamin, ((0, Bp - B), (0, NLAM - 5)))             # (Bp, 8)
    dlam = jnp.pad(dlambdas.astype(f32), ((0, Bp - B), (0, 0)))      # (Bp, 2)

    # ---- conv1 im2col (one-hot -> exact bf16), embedded in padded frames ----
    # TODO(synk): conv1 im2col stays in the wrapper (stride-2 tap slices are awkward
    # in-kernel); its HBM cost is cut by storing it in bf16.
    x_oh = jax.nn.one_hot(zs.astype(jnp.int32), C, dtype=f32)        # (B, n_sites, C)
    x_pad = jnp.pad(x_oh, ((0, 0), (P1, P1), (0, 0)))
    idx = S1 * jnp.arange(L1)[:, None] + jnp.arange(K1)[None, :]     # (L1, K1)
    x1 = x_pad[:, idx, :].reshape(B, L1, K1 * C)                     # (B, L1, 48)
    x1f = jnp.pad(x1, ((0, Bp - B), (P2, P2), (0, 0)))               # (Bp, F, 48)
    x1f = x1f.reshape(Bp * F, K1 * C).astype(bf16)

    # ---- per-tile constants: frame-pad mask and mean-pool matrix ------------
    frame_mask = jnp.ones((F,), f32).at[0].set(0.0).at[F - 1].set(0.0)
    mask = jnp.tile(frame_mask, (TB,)).reshape(TB * F, 1)
    r = jnp.arange(Mout)[None, :]
    b0 = (jnp.arange(TB) * F)[:, None]
    pool = (((r >= b0) & (r < b0 + L2)).astype(f32)) / float(L2)      # (TB, Mout)

    # ---- weights in matmul-ready (kernel) layout -----------------------------
    w1 = jnp.transpose(params['conv1_w'], (2, 1, 0)).reshape(K1 * C, C1)
    w1 = jnp.pad(w1, ((0, 0), (0, C1P - C1))).astype(bf16)            # (48, 64)
    b1 = jnp.pad(params['conv1_b'].reshape(1, C1),
                 ((0, 0), (0, C1P - C1))).astype(f32)                 # (1, 64)
    w2 = jnp.transpose(params['conv2_w'], (2, 1, 0))                  # (K2, 48, 64)
    w2 = jnp.pad(w2, ((0, 0), (0, C1P - C1), (0, 0)))
    w2 = w2.reshape(K2 * C1P, C2).astype(bf16)                        # (256, 64)
    b2 = params['conv2_b'].reshape(1, C2).astype(f32)

    wl1 = jnp.pad(params['lfc1_w'].T, ((0, NLAM - 5), (0, 0))).astype(bf16)  # (8, 32)
    bl1 = params['lfc1_b'].reshape(1, 32).astype(f32)
    wl2 = params['lfc2_w'].T.astype(bf16)                             # (32, 64)
    bl2 = params['lfc2_b'].reshape(1, 64).astype(f32)
    wf1 = params['fc1_w'].T.astype(bf16)                              # (128, 128)
    wf1l, wf1z = wf1[:64], wf1[64:]
    bf1 = params['fc1_b'].reshape(1, 128).astype(f32)
    wf2 = params['fc2_w'].T.astype(bf16)                              # (128, 64)
    bf2 = params['fc2_b'].reshape(1, 64).astype(f32)
    wf3 = params['fc3_w'].T.astype(bf16)                              # (64, 2)
    bf3 = params['fc3_b'].reshape(1, 2).astype(f32)

    inputs = (x1f, lamin, dlam, mask, pool,
              w1, b1, w2, b2, wl1, bl1, wl2, bl2,
              wf1l, wf1z, bf1, wf2, bf2, wf3, bf3)

    def tile_spec(shape):
        return pl.BlockSpec(shape, lambda i: (i, 0))

    def const_spec(shape):
        return pl.BlockSpec(shape, lambda i: (0, 0))

    in_specs = ([tile_spec((TB * F, K1 * C)),
                 tile_spec((TB, NLAM)),
                 tile_spec((TB, 2)),
                 const_spec(mask.shape),
                 const_spec(pool.shape)]
                + [const_spec(a.shape) for a in inputs[5:]])

    out1, out2 = pl.pallas_call(
        functools.partial(_model1d_kernel, Mout=Mout),
        grid=(Bp // TB,),
        in_specs=in_specs,
        out_specs=(pl.BlockSpec((TB, 2), lambda i: (i, 0)),
                   pl.BlockSpec((TB, 1), lambda i: (i, 0))),
        out_shape=(jax.ShapeDtypeStruct((Bp, 2), f32),
                   jax.ShapeDtypeStruct((Bp, 1), f32)),
        compiler_params=pltpu.CompilerParams(
            dimension_semantics=("parallel",),
            vmem_limit_bytes=32 * 1024 * 1024),
    )(*inputs)
    return out1[:B], out2[:B, 0]


# ----------------------------------------------------------------------------
# Deterministic parameter init (PyTorch layouts: Linear (out,in), Conv1d (out,in,k))
# ----------------------------------------------------------------------------
def init_params(key, in_classes):
    keys = jax.random.split(key, 14)
    def w(k, shape, scale=0.1):
        return (scale * jax.random.normal(k, shape)).astype(jnp.float32)
    return {
        'lfc1_w': w(keys[0], (32, 5)),    'lfc1_b': w(keys[1], (32,)),
        'lfc2_w': w(keys[2], (64, 32)),   'lfc2_b': w(keys[3], (64,)),
        'conv1_w': w(keys[4], (48, in_classes, 8)), 'conv1_b': w(keys[5], (48,)),
        'conv2_w': w(keys[6], (64, 48, 4)),         'conv2_b': w(keys[7], (64,)),
        'fc1_w': w(keys[8], (128, 128)),  'fc1_b': w(keys[9], (128,)),
        'fc2_w': w(keys[10], (64, 128)),  'fc2_b': w(keys[11], (64,)),
        'fc3_w': w(keys[12], (2, 64)),    'fc3_b': w(keys[13], (2,)),
    }


# ----------------------------------------------------------------------------
# Pure-JAX reference (mirrors the PyTorch forward) for a sanity check.
# ----------------------------------------------------------------------------
def reference_forward(params, lambdas, dlambdas, zs, *,
                      n_sites, in_classes, lambda_coeff=1.0, dlambda_coeff=1.0):
    relu = jax.nn.relu
    hi = lax.Precision.HIGHEST
    dc2 = dlambda_coeff ** 2
    dl0 = dlambdas[:, 0:1]; dl1 = dlambdas[:, 1:2]
    lam_in = jnp.concatenate(
        [dc2 * (dl0 ** 2 - 2.0 / 3.0), dc2 * (dl0 * dl1),
         dc2 * (dl1 ** 2 - 2.0 / 3.0), lambda_coeff * lambdas], axis=-1)
    h = relu(jnp.dot(lam_in, params['lfc1_w'].T, precision=hi) + params['lfc1_b'])
    lam_out = relu(jnp.dot(h, params['lfc2_w'].T, precision=hi) + params['lfc2_b'])

    x = jax.nn.one_hot(zs.astype(jnp.int32), in_classes, dtype=jnp.float32)
    x = jnp.transpose(x, (0, 2, 1))                                   # (B, C, n_sites)
    y = lax.conv_general_dilated(x, params['conv1_w'], (2,), [(2, 2)],
                                 dimension_numbers=('NCH', 'OIH', 'NCH'),
                                 precision=hi)
    y = relu(y + params['conv1_b'][None, :, None])
    y = lax.conv_general_dilated(y, params['conv2_w'], (1,), [(1, 1)],
                                 dimension_numbers=('NCH', 'OIH', 'NCH'),
                                 precision=hi)
    y = relu(y + params['conv2_b'][None, :, None])
    zs_out = jnp.mean(y, axis=-1)                                     # (B, 64)

    comb = jnp.concatenate([lam_out, zs_out], axis=-1)
    f1 = relu(jnp.dot(comb, params['fc1_w'].T, precision=hi) + params['fc1_b'])
    f2 = relu(jnp.dot(f1, params['fc2_w'].T, precision=hi) + params['fc2_b'])
    out1 = jnp.dot(f2, params['fc3_w'].T, precision=hi) + params['fc3_b']
    out2 = jnp.sum(out1 * dlambdas, axis=-1)
    return out1, out2


if __name__ == "__main__":
    B, N_SITES, IN_CLASSES = 64, 32, 6
    LAMBDA_COEFF, DLAMBDA_COEFF = 1.0, 1.0

    key = jax.random.PRNGKey(0)
    kp, kl, kd, kz = jax.random.split(key, 4)
    params = init_params(kp, IN_CLASSES)

    lambdas = jax.random.uniform(kl, (B, 2), dtype=jnp.float32)
    dlambdas = jax.random.normal(kd, (B, 2), dtype=jnp.float32)
    zs = jax.random.randint(kz, (B, N_SITES), 0, IN_CLASSES).astype(jnp.uint8)

    out1, out2 = model1d_forward(
        params, lambdas, dlambdas, zs,
        n_sites=N_SITES, in_classes=IN_CLASSES,
        lambda_coeff=LAMBDA_COEFF, dlambda_coeff=DLAMBDA_COEFF,
        batch_tile=16)
    jax.block_until_ready((out1, out2))

    ref1, ref2 = reference_forward(
        params, lambdas, dlambdas, zs,
        n_sites=N_SITES, in_classes=IN_CLASSES,
        lambda_coeff=LAMBDA_COEFF, dlambda_coeff=DLAMBDA_COEFF)

    assert out1.shape == (B, 2) and out2.shape == (B,)
    assert jnp.allclose(out1, ref1, atol=1e-2, rtol=1e-2), \
        float(jnp.max(jnp.abs(out1 - ref1)))
    assert jnp.allclose(out2, ref2, atol=1e-2, rtol=1e-2), \
        float(jnp.max(jnp.abs(out2 - ref2)))
    print("KERNEL_OK")
</pallas_src>

<mosaic_0001>
module attributes {stable_mosaic.version = 11 : i64} {
  func.func @_model1d_kernel(%arg0: i32, %arg1: memref<272x48xbf16, #tpu.memory_space<vmem>>, %arg2: memref<16x8xf32, #tpu.memory_space<vmem>>, %arg3: memref<16x2xf32, #tpu.memory_space<vmem>>, %arg4: memref<272x1xf32, #tpu.memory_space<vmem>>, %arg5: memref<16x269xf32, #tpu.memory_space<vmem>>, %arg6: memref<48x64xbf16, #tpu.memory_space<vmem>>, %arg7: memref<1x64xf32, #tpu.memory_space<vmem>>, %arg8: memref<256x64xbf16, #tpu.memory_space<vmem>>, %arg9: memref<1x64xf32, #tpu.memory_space<vmem>>, %arg10: memref<8x32xbf16, #tpu.memory_space<vmem>>, %arg11: memref<1x32xf32, #tpu.memory_space<vmem>>, %arg12: memref<32x64xbf16, #tpu.memory_space<vmem>>, %arg13: memref<1x64xf32, #tpu.memory_space<vmem>>, %arg14: memref<64x128xbf16, #tpu.memory_space<vmem>>, %arg15: memref<64x128xbf16, #tpu.memory_space<vmem>>, %arg16: memref<1x128xf32, #tpu.memory_space<vmem>>, %arg17: memref<128x64xbf16, #tpu.memory_space<vmem>>, %arg18: memref<1x64xf32, #tpu.memory_space<vmem>>, %arg19: memref<64x2xbf16, #tpu.memory_space<vmem>>, %arg20: memref<1x2xf32, #tpu.memory_space<vmem>>, %arg21: memref<16x2xf32, #tpu.memory_space<vmem>>, %arg22: memref<16x1xf32, #tpu.memory_space<vmem>>) attributes {dimension_semantics = [#tpu.dimension_semantics<parallel>], iteration_bounds = array<i64: 4>, scalar_prefetch = 0 : i64, scratch_operands = 0 : i64, tpu.core_type = #tpu.core_type<tc>, window_params = [{transform_indices = @transform_0, window_bounds = array<i64: 272, 48>}, {transform_indices = @transform_1, window_bounds = array<i64: 16, 8>}, {transform_indices = @transform_2, window_bounds = array<i64: 16, 2>}, {pipeline_mode = #tpu.pipeline_mode<synchronous>, transform_indices = @transform_3, window_bounds = array<i64: 272, 1>}, {pipeline_mode = #tpu.pipeline_mode<synchronous>, transform_indices = @transform_4, window_bounds = array<i64: 16, 269>}, {pipeline_mode = #tpu.pipeline_mode<synchronous>, transform_indices = @transform_5, window_bounds = array<i64: 48, 64>}, {pipeline_mode = #tpu.pipeline_mode<synchronous>, transform_indices = @transform_6, window_bounds = array<i64: 1, 64>}, {pipeline_mode = #tpu.pipeline_mode<synchronous>, transform_indices = @transform_7, window_bounds = array<i64: 256, 64>}, {pipeline_mode = #tpu.pipeline_mode<synchronous>, transform_indices = @transform_8, window_bounds = array<i64: 1, 64>}, {pipeline_mode = #tpu.pipeline_mode<synchronous>, transform_indices = @transform_9, window_bounds = array<i64: 8, 32>}, {pipeline_mode = #tpu.pipeline_mode<synchronous>, transform_indices = @transform_10, window_bounds = array<i64: 1, 32>}, {pipeline_mode = #tpu.pipeline_mode<synchronous>, transform_indices = @transform_11, window_bounds = array<i64: 32, 64>}, {pipeline_mode = #tpu.pipeline_mode<synchronous>, transform_indices = @transform_12, window_bounds = array<i64: 1, 64>}, {pipeline_mode = #tpu.pipeline_mode<synchronous>, transform_indices = @transform_13, window_bounds = array<i64: 64, 128>}, {pipeline_mode = #tpu.pipeline_mode<synchronous>, transform_indices = @transform_14, window_bounds = array<i64: 64, 128>}, {pipeline_mode = #tpu.pipeline_mode<synchronous>, transform_indices = @transform_15, window_bounds = array<i64: 1, 128>}, {pipeline_mode = #tpu.pipeline_mode<synchronous>, transform_indices = @transform_16, window_bounds = array<i64: 128, 64>}, {pipeline_mode = #tpu.pipeline_mode<synchronous>, transform_indices = @transform_17, window_bounds = array<i64: 1, 64>}, {pipeline_mode = #tpu.pipeline_mode<synchronous>, transform_indices = @transform_18, window_bounds = array<i64: 64, 2>}, {pipeline_mode = #tpu.pipeline_mode<synchronous>, transform_indices = @transform_19, window_bounds = array<i64: 1, 2>}, {transform_indices = @transform_20, window_bounds = array<i64: 16, 2>}, {transform_indices = @transform_21, window_bounds = array<i64: 16, 1>}]} {
    %c0 = arith.constant 0 : index
    %c0_0 = arith.constant 0 : index
    %0 = vector.load %arg1[%c0, %c0_0] : memref<272x48xbf16, #tpu.memory_space<vmem>>, vector<272x48xbf16>
    %c0_1 = arith.constant 0 : index
    %c0_2 = arith.constant 0 : index
    %1 = vector.load %arg6[%c0_1, %c0_2] : memref<48x64xbf16, #tpu.memory_space<vmem>>, vector<48x64xbf16>
    %cst = arith.constant dense<0.000000e+00> : vector<272x64xf32>
    %2 = tpu.matmul %0, %1, %cst {dimension_numbers = #tpu.dot_dimension_numbers<[1], [0], [0], [1], [0, 0, 1, 1], [], []>} : vector<272x48xbf16>, vector<48x64xbf16>, vector<272x64xf32> -> vector<272x64xf32>
    %c0_3 = arith.constant 0 : index
    %c0_4 = arith.constant 0 : index
    %3 = vector.load %arg7[%c0_3, %c0_4] : memref<1x64xf32, #tpu.memory_space<vmem>>, vector<1x64xf32>
    %4 = vector.broadcast %3 : vector<1x64xf32> to vector<272x64xf32>
    %5 = arith.addf %2, %4 : vector<272x64xf32>
    %cst_5 = arith.constant 0.000000e+00 : f32
    %6 = vector.broadcast %cst_5 : f32 to vector<272x64xf32>
    %7 = arith.maximumf %5, %6 : vector<272x64xf32>
    %c0_6 = arith.constant 0 : index
    %c0_7 = arith.constant 0 : index
    %8 = vector.load %arg4[%c0_6, %c0_7] : memref<272x1xf32, #tpu.memory_space<vmem>>, vector<272x1xf32>
    %9 = vector.broadcast %8 : vector<272x1xf32> to vector<272x64xf32>
    %10 = arith.mulf %7, %9 : vector<272x64xf32>
    %11 = vector.extract_strided_slice %10 {offsets = [0, 0], sizes = [269, 64], strides = [1, 1]} : vector<272x64xf32> to vector<269x64xf32>
    %12 = vector.extract_strided_slice %10 {offsets = [1, 0], sizes = [269, 64], strides = [1, 1]} : vector<272x64xf32> to vector<269x64xf32>
    %13 = vector.extract_strided_slice %10 {offsets = [2, 0], sizes = [269, 64], strides = [1, 1]} : vector<272x64xf32> to vector<269x64xf32>
    %14 = vector.extract_strided_slice %10 {offsets = [3, 0], sizes = [269, 64], strides = [1, 1]} : vector<272x64xf32> to vector<269x64xf32>
    %15 = tpu.concatenate %11, %12, %13, %14 in 1 : vector<269x64xf32>, vector<269x64xf32>, vector<269x64xf32>, vector<269x64xf32> -> vector<269x256xf32>
    %16 = arith.truncf %15 : vector<269x256xf32> to vector<269x256xbf16>
    %c0_8 = arith.constant 0 : index
    %c0_9 = arith.constant 0 : index
    %17 = vector.load %arg8[%c0_8, %c0_9] : memref<256x64xbf16, #tpu.memory_space<vmem>>, vector<256x64xbf16>
    %cst_10 = arith.constant dense<0.000000e+00> : vector<269x64xf32>
    %18 = tpu.matmul %16, %17, %cst_10 {dimension_numbers = #tpu.dot_dimension_numbers<[1], [0], [0], [1], [0, 0, 1, 1], [], []>} : vector<269x256xbf16>, vector<256x64xbf16>, vector<269x64xf32> -> vector<269x64xf32>
    %c0_11 = arith.constant 0 : index
    %c0_12 = arith.constant 0 : index
    %19 = vector.load %arg9[%c0_11, %c0_12] : memref<1x64xf32, #tpu.memory_space<vmem>>, vector<1x64xf32>
    %20 = vector.broadcast %19 : vector<1x64xf32> to vector<269x64xf32>
    %21 = arith.addf %18, %20 : vector<269x64xf32>
    %cst_13 = arith.constant 0.000000e+00 : f32
    %22 = vector.broadcast %cst_13 : f32 to vector<269x64xf32>
    %23 = arith.maximumf %21, %22 : vector<269x64xf32>
    %c0_14 = arith.constant 0 : index
    %c0_15 = arith.constant 0 : index
    %24 = vector.load %arg5[%c0_14, %c0_15] : memref<16x269xf32, #tpu.memory_space<vmem>>, vector<16x269xf32>
    %cst_16 = arith.constant dense<0.000000e+00> : vector<16x64xf32>
    %25 = tpu.matmul %24, %23, %cst_16 {dimension_numbers = #tpu.dot_dimension_numbers<[1], [0], [0], [1], [0, 0, 1, 1], [], []>} : vector<16x269xf32>, vector<269x64xf32>, vector<16x64xf32> -> vector<16x64xf32>
    %c0_17 = arith.constant 0 : index
    %c0_18 = arith.constant 0 : index
    %26 = vector.load %arg2[%c0_17, %c0_18] : memref<16x8xf32, #tpu.memory_space<vmem>>, vector<16x8xf32>
    %27 = arith.truncf %26 : vector<16x8xf32> to vector<16x8xbf16>
    %c0_19 = arith.constant 0 : index
    %c0_20 = arith.constant 0 : index
    %28 = vector.load %arg10[%c0_19, %c0_20] : memref<8x32xbf16, #tpu.memory_space<vmem>>, vector<8x32xbf16>
    %cst_21 = arith.constant dense<0.000000e+00> : vector<16x32xf32>
    %29 = tpu.matmul %27, %28, %cst_21 {dimension_numbers = #tpu.dot_dimension_numbers<[1], [0], [0], [1], [0, 0, 1, 1], [], []>} : vector<16x8xbf16>, vector<8x32xbf16>, vector<16x32xf32> -> vector<16x32xf32>
    %c0_22 = arith.constant 0 : index
    %c0_23 = arith.constant 0 : index
    %30 = vector.load %arg11[%c0_22, %c0_23] : memref<1x32xf32, #tpu.memory_space<vmem>>, vector<1x32xf32>
    %31 = vector.broadcast %30 : vector<1x32xf32> to vector<16x32xf32>
    %32 = arith.addf %29, %31 : vector<16x32xf32>
    %cst_24 = arith.constant 0.000000e+00 : f32
    %33 = vector.broadcast %cst_24 : f32 to vector<16x32xf32>
    %34 = arith.maximumf %32, %33 : vector<16x32xf32>
    %35 = arith.truncf %34 : vector<16x32xf32> to vector<16x32xbf16>
    %c0_25 = arith.constant 0 : index
    %c0_26 = arith.constant 0 : index
    %36 = vector.load %arg12[%c0_25, %c0_26] : memref<32x64xbf16, #tpu.memory_space<vmem>>, vector<32x64xbf16>
    %cst_27 = arith.constant dense<0.000000e+00> : vector<16x64xf32>
    %37 = tpu.matmul %35, %36, %cst_27 {dimension_numbers = #tpu.dot_dimension_numbers<[1], [0], [0], [1], [0, 0, 1, 1], [], []>} : vector<16x32xbf16>, vector<32x64xbf16>, vector<16x64xf32> -> vector<16x64xf32>
    %c0_28 = arith.constant 0 : index
    %c0_29 = arith.constant 0 : index
    %38 = vector.load %arg13[%c0_28, %c0_29] : memref<1x64xf32, #tpu.memory_space<vmem>>, vector<1x64xf32>
    %39 = vector.broadcast %38 : vector<1x64xf32> to vector<16x64xf32>
    %40 = arith.addf %37, %39 : vector<16x64xf32>
    %cst_30 = arith.constant 0.000000e+00 : f32
    %41 = vector.broadcast %cst_30 : f32 to vector<16x64xf32>
    %42 = arith.maximumf %40, %41 : vector<16x64xf32>
    %43 = arith.truncf %42 : vector<16x64xf32> to vector<16x64xbf16>
    %c0_31 = arith.constant 0 : index
    %c0_32 = arith.constant 0 : index
    %44 = vector.load %arg14[%c0_31, %c0_32] : memref<64x128xbf16, #tpu.memory_space<vmem>>, vector<64x128xbf16>
    %cst_33 = arith.constant dense<0.000000e+00> : vector<16x128xf32>
    %45 = tpu.matmul %43, %44, %cst_33 {dimension_numbers = #tpu.dot_dimension_numbers<[1], [0], [0], [1], [0, 0, 1, 1], [], []>} : vector<16x64xbf16>, vector<64x128xbf16>, vector<16x128xf32> -> vector<16x128xf32>
    %46 = arith.truncf %25 : vector<16x64xf32> to vector<16x64xbf16>
    %c0_34 = arith.constant 0 : index
    %c0_35 = arith.constant 0 : index
    %47 = vector.load %arg15[%c0_34, %c0_35] : memref<64x128xbf16, #tpu.memory_space<vmem>>, vector<64x128xbf16>
    %cst_36 = arith.constant dense<0.000000e+00> : vector<16x128xf32>
    %48 = tpu.matmul %46, %47, %cst_36 {dimension_numbers = #tpu.dot_dimension_numbers<[1], [0], [0], [1], [0, 0, 1, 1], [], []>} : vector<16x64xbf16>, vector<64x128xbf16>, vector<16x128xf32> -> vector<16x128xf32>
    %49 = arith.addf %45, %48 : vector<16x128xf32>
    %c0_37 = arith.constant 0 : index
    %c0_38 = arith.constant 0 : index
    %50 = vector.load %arg16[%c0_37, %c0_38] : memref<1x128xf32, #tpu.memory_space<vmem>>, vector<1x128xf32>
    %51 = vector.broadcast %50 : vector<1x128xf32> to vector<16x128xf32>
    %52 = arith.addf %49, %51 : vector<16x128xf32>
    %cst_39 = arith.constant 0.000000e+00 : f32
    %53 = vector.broadcast %cst_39 : f32 to vector<16x128xf32>
    %54 = arith.maximumf %52, %53 : vector<16x128xf32>
    %55 = arith.truncf %54 : vector<16x128xf32> to vector<16x128xbf16>
    %c0_40 = arith.constant 0 : index
    %c0_41 = arith.constant 0 : index
    %56 = vector.load %arg17[%c0_40, %c0_41] : memref<128x64xbf16, #tpu.memory_space<vmem>>, vector<128x64xbf16>
    %cst_42 = arith.constant dense<0.000000e+00> : vector<16x64xf32>
    %57 = tpu.matmul %55, %56, %cst_42 {dimension_numbers = #tpu.dot_dimension_numbers<[1], [0], [0], [1], [0, 0, 1, 1], [], []>} : vector<16x128xbf16>, vector<128x64xbf16>, vector<16x64xf32> -> vector<16x64xf32>
    %c0_43 = arith.constant 0 : index
    %c0_44 = arith.constant 0 : index
    %58 = vector.load %arg18[%c0_43, %c0_44] : memref<1x64xf32, #tpu.memory_space<vmem>>, vector<1x64xf32>
    %59 = vector.broadcast %58 : vector<1x64xf32> to vector<16x64xf32>
    %60 = arith.addf %57, %59 : vector<16x64xf32>
    %cst_45 = arith.constant 0.000000e+00 : f32
    %61 = vector.broadcast %cst_45 : f32 to vector<16x64xf32>
    %62 = arith.maximumf %60, %61 : vector<16x64xf32>
    %63 = arith.truncf %62 : vector<16x64xf32> to vector<16x64xbf16>
    %c0_46 = arith.constant 0 : index
    %c0_47 = arith.constant 0 : index
    %64 = vector.load %arg19[%c0_46, %c0_47] : memref<64x2xbf16, #tpu.memory_space<vmem>>, vector<64x2xbf16>
    %cst_48 = arith.constant dense<0.000000e+00> : vector<16x2xf32>
    %65 = tpu.matmul %63, %64, %cst_48 {dimension_numbers = #tpu.dot_dimension_numbers<[1], [0], [0], [1], [0, 0, 1, 1], [], []>} : vector<16x64xbf16>, vector<64x2xbf16>, vector<16x2xf32> -> vector<16x2xf32>
    %c0_49 = arith.constant 0 : index
    %c0_50 = arith.constant 0 : index
    %66 = vector.load %arg20[%c0_49, %c0_50] : memref<1x2xf32, #tpu.memory_space<vmem>>, vector<1x2xf32>
    %67 = vector.broadcast %66 : vector<1x2xf32> to vector<16x2xf32>
    %68 = arith.addf %65, %67 : vector<16x2xf32>
    %c0_51 = arith.constant 0 : index
    %c0_52 = arith.constant 0 : index
    %69 = vector.load %arg21[%c0_51, %c0_52] : memref<16x2xf32, #tpu.memory_space<vmem>>, vector<16x2xf32>
    tpu.vector_store %arg21[%c0_51, %c0_52], %68 {strides = array<i32>} : memref<16x2xf32, #tpu.memory_space<vmem>>, vector<16x2xf32>,
    %c0_53 = arith.constant 0 : index
    %c0_54 = arith.constant 0 : index
    %70 = vector.load %arg3[%c0_53, %c0_54] : memref<16x2xf32, #tpu.memory_space<vmem>>, vector<16x2xf32>
    %71 = arith.mulf %68, %70 : vector<16x2xf32>
    %cst_55 = arith.constant dense<0.000000e+00> : vector<16xf32>
    %72 = vector.multi_reduction <add>, %71, %cst_55 [1] : vector<16x2xf32> to vector<16xf32>
    %73 = vector.shape_cast %72 : vector<16xf32> to vector<16x1xf32>
    %c0_56 = arith.constant 0 : index
    %c0_57 = arith.constant 0 : index
    %74 = vector.load %arg22[%c0_56, %c0_57] : memref<16x1xf32, #tpu.memory_space<vmem>>, vector<16x1xf32>
    tpu.vector_store %arg22[%c0_56, %c0_57], %73 {strides = array<i32>} : memref<16x1xf32, #tpu.memory_space<vmem>>, vector<16x1xf32>,
    return
  }
  func.func @transform_0(%arg0: i32) -> (i32, i32) {
    %c0_i32 = arith.constant 0 : i32
    %c0_i32_0 = arith.constant 0 : i32
    return %arg0, %c0_i32 : i32, i32
  }
  func.func @transform_1(%arg0: i32) -> (i32, i32) {
    %c0_i32 = arith.constant 0 : i32
    %c0_i32_0 = arith.constant 0 : i32
    return %arg0, %c0_i32 : i32, i32
  }
  func.func @transform_2(%arg0: i32) -> (i32, i32) {
    %c0_i32 = arith.constant 0 : i32
    %c0_i32_0 = arith.constant 0 : i32
    return %arg0, %c0_i32 : i32, i32
  }
  func.func @transform_3(%arg0: i32) -> (i32, i32) {
    %c0_i32 = arith.constant 0 : i32
    %c0_i32_0 = arith.constant 0 : i32
    %c0_i32_1 = arith.constant 0 : i32
    return %c0_i32, %c0_i32_0 : i32, i32
  }
  func.func @transform_4(%arg0: i32) -> (i32, i32) {
    %c0_i32 = arith.constant 0 : i32
    %c0_i32_0 = arith.constant 0 : i32
    %c0_i32_1 = arith.constant 0 : i32
    return %c0_i32, %c0_i32_0 : i32, i32
  }
  func.func @transform_5(%arg0: i32) -> (i32, i32) {
    %c0_i32 = arith.constant 0 : i32
    %c0_i32_0 = arith.constant 0 : i32
    %c0_i32_1 = arith.constant 0 : i32
    return %c0_i32, %c0_i32_0 : i32, i32
  }
  func.func @transform_6(%arg0: i32) -> (i32, i32) {
    %c0_i32 = arith.constant 0 : i32
    %c0_i32_0 = arith.constant 0 : i32
    %c0_i32_1 = arith.constant 0 : i32
    return %c0_i32, %c0_i32_0 : i32, i32
  }
  func.func @transform_7(%arg0: i32) -> (i32, i32) {
    %c0_i32 = arith.constant 0 : i32
    %c0_i32_0 = arith.constant 0 : i32
    %c0_i32_1 = arith.constant 0 : i32
    return %c0_i32, %c0_i32_0 : i32, i32
  }
  func.func @transform_8(%arg0: i32) -> (i32, i32) {
    %c0_i32 = arith.constant 0 : i32
    %c0_i32_0 = arith.constant 0 : i32
    %c0_i32_1 = arith.constant 0 : i32
    return %c0_i32, %c0_i32_0 : i32, i32
  }
  func.func @transform_9(%arg0: i32) -> (i32, i32) {
    %c0_i32 = arith.constant 0 : i32
    %c0_i32_0 = arith.constant 0 : i32
    %c0_i32_1 = arith.constant 0 : i32
    return %c0_i32, %c0_i32_0 : i32, i32
  }
  func.func @transform_10(%arg0: i32) -> (i32, i32) {
    %c0_i32 = arith.constant 0 : i32
    %c0_i32_0 = arith.constant 0 : i32
    %c0_i32_1 = arith.constant 0 : i32
    return %c0_i32, %c0_i32_0 : i32, i32
  }
  func.func @transform_11(%arg0: i32) -> (i32, i32) {
    %c0_i32 = arith.constant 0 : i32
    %c0_i32_0 = arith.constant 0 : i32
    %c0_i32_1 = arith.constant 0 : i32
    return %c0_i32, %c0_i32_0 : i32, i32
  }
  func.func @transform_12(%arg0: i32) -> (i32, i32) {
    %c0_i32 = arith.constant 0 : i32
    %c0_i32_0 = arith.constant 0 : i32
    %c0_i32_1 = arith.constant 0 : i32
    return %c0_i32, %c0_i32_0 : i32, i32
  }
  func.func @transform_13(%arg0: i32) -> (i32, i32) {
    %c0_i32 = arith.constant 0 : i32
    %c0_i32_0 = arith.constant 0 : i32
    %c0_i32_1 = arith.constant 0 : i32
    return %c0_i32, %c0_i32_0 : i32, i32
  }
  func.func @transform_14(%arg0: i32) -> (i32, i32) {
    %c0_i32 = arith.constant 0 : i32
    %c0_i32_0 = arith.constant 0 : i32
    %c0_i32_1 = arith.constant 0 : i32
    return %c0_i32, %c0_i32_0 : i32, i32
  }
  func.func @transform_15(%arg0: i32) -> (i32, i32) {
    %c0_i32 = arith.constant 0 : i32
    %c0_i32_0 = arith.constant 0 : i32
    %c0_i32_1 = arith.constant 0 : i32
    return %c0_i32, %c0_i32_0 : i32, i32
  }
  func.func @transform_16(%arg0: i32) -> (i32, i32) {
    %c0_i32 = arith.constant 0 : i32
    %c0_i32_0 = arith.constant 0 : i32
    %c0_i32_1 = arith.constant 0 : i32
    return %c0_i32, %c0_i32_0 : i32, i32
  }
  func.func @transform_17(%arg0: i32) -> (i32, i32) {
    %c0_i32 = arith.constant 0 : i32
    %c0_i32_0 = arith.constant 0 : i32
    %c0_i32_1 = arith.constant 0 : i32
    return %c0_i32, %c0_i32_0 : i32, i32
  }
  func.func @transform_18(%arg0: i32) -> (i32, i32) {
    %c0_i32 = arith.constant 0 : i32
    %c0_i32_0 = arith.constant 0 : i32
    %c0_i32_1 = arith.constant 0 : i32
    return %c0_i32, %c0_i32_0 : i32, i32
  }
  func.func @transform_19(%arg0: i32) -> (i32, i32) {
    %c0_i32 = arith.constant 0 : i32
    %c0_i32_0 = arith.constant 0 : i32
    %c0_i32_1 = arith.constant 0 : i32
    return %c0_i32, %c0_i32_0 : i32, i32
  }
  func.func @transform_20(%arg0: i32) -> (i32, i32) {
    %c0_i32 = arith.constant 0 : i32
    %c0_i32_0 = arith.constant 0 : i32
    return %arg0, %c0_i32 : i32, i32
  }
  func.func @transform_21(%arg0: i32) -> (i32, i32) {
    %c0_i32 = arith.constant 0 : i32
    %c0_i32_0 = arith.constant 0 : i32
    return %arg0, %c0_i32 : i32, i32
  }
}

</mosaic_0001>

<bundles_post_ra>
// kernel: tpu_custom_call.1
= control target key start
LH: loop header
LB: loop body
LE: loop exit
PB: predicated region body
PF: predicated region fallthrough
CT: control target
= control target key end

     0   :  { %s4829_s0 = inlined_call_operand.vmem [shape: bf16[1088,48], index: 0, kind: input, shape index: {}]   ;;  %s4830_s1 = inlined_call_operand.vmem [shape: f32[64,8], index: 1, kind: input, shape index: {}]   ;;  %s4831_s2 = inlined_call_operand.vmem [shape: f32[64,2], index: 2, kind: input, shape index: {}]   ;;  %s4832_s3 = inlined_call_operand.vmem [shape: f32[272,1], index: 3, kind: input, shape index: {}]   ;;  %s4833_s4 = inlined_call_operand.vmem [shape: f32[16,269], index: 4, kind: input, shape index: {}]   ;;  %s4834_s5 = inlined_call_operand.vmem [shape: bf16[48,64], index: 5, kind: input, shape index: {}]   ;;  %s4835_s6 = inlined_call_operand.vmem [shape: f32[1,64], index: 6, kind: input, shape index: {}]   ;;  %s4836_s7 = inlined_call_operand.vmem [shape: bf16[256,64], index: 7, kind: input, shape index: {}]   ;;  %s4837_s8 = inlined_call_operand.vmem [shape: f32[1,64], index: 8, kind: input, shape index: {}]   ;;  %s4838_s9 = inlined_call_operand.vmem [shape: bf16[8,32], index: 9, kind: input, shape index: {}]   ;;  %s4839_s10 = inlined_call_operand.vmem [shape: f32[1,32], index: 10, kind: input, shape index: {}]   ;;  %s4840_s11 = inlined_call_operand.vmem [shape: bf16[32,64], index: 11, kind: input, shape index: {}]   ;;  %s4841_s12 = inlined_call_operand.vmem [shape: f32[1,64], index: 12, kind: input, shape index: {}]   ;;  %s4842_s13 = inlined_call_operand.vmem [shape: bf16[64,128], index: 13, kind: input, shape index: {}]   ;;  %s4843_s14 = inlined_call_operand.vmem [shape: bf16[64,128], index: 14, kind: input, shape index: {}]   ;;  %s4844_s15 = inlined_call_operand.vmem [shape: f32[1,128], index: 15, kind: input, shape index: {}]   ;;  %s4845_s16 = inlined_call_operand.vmem [shape: bf16[128,64], index: 16, kind: input, shape index: {}]   ;;  %s4846_s17 = inlined_call_operand.vmem [shape: f32[1,64], index: 17, kind: input, shape index: {}]   ;;  %s4847_s18 = inlined_call_operand.vmem [shape: bf16[64,2], index: 18, kind: input, shape index: {}]   ;;  %s4848_s19 = inlined_call_operand.vmem [shape: f32[1,2], index: 19, kind: input, shape index: {}]   ;;  %s4849_s20 = inlined_call_operand.vmem [shape: f32[64,2], index: 20, kind: output, shape index: {0}]   ;;  %s4850_s21 = inlined_call_operand.vmem [shape: f32[64,1], index: 21, kind: output, shape index: {1}]  }
   0x1   :  { %4855 = sst [smem:[#allocation2_spill]] %s4829_s0 }
   0x2   :  { %4856 = sst [smem:[#allocation3_spill]] %s4830_s1 }
   0x3   :  { %4857 = sst [smem:[#allocation4_spill]] %s4831_s2  ;;  %s3825_s2 = smov 0  }
   0x4   :  { %4858 = sst [smem:[#allocation5_spill]] %s4832_s3 }
   0x5   :  { %4859 = sst [smem:[#allocation6_spill]] %s4833_s4 }
   0x6   :  { %4860 = sst [smem:[#allocation7_spill]] %s4834_s5 }
   0x7 LB: > { %s4854_s25 = sadd.s32 4294967295, %s3708_s2   ;;  %p3076_p0 = scmp.ge.s32.totalorder %s3708_s2, 1  ;;  %s3708_s2 = sphi %s3825_s2, %s32_s2  }
   0x8   : > { %p613_p1 = scmp.lt.s32.totalorder %s3708_s2, 5 }
   0xa   : > { %p614_p2 = pnand %p3076_p0, %p613_p1 }
   0xb   : > { %s4861_s3 = sld [smem:[#allocation7_spill]] (!%p614_p2)  ;;  %v3710_v1 = vmov (!%p614_p2), 0.0   ;;  %vm3711_vm0 = vmmov (!%p614_p2), 0   ;;  %s688_s0 = smul.u32 (!%p614_p2), 34, %s4854_s25  ;;  %v3712_v4 = vmov (!%p614_p2), 0   ;;  %vm869_vm1 = vcmask (!%p614_p2), 392192  }
   0xc   : > { %617 = sbr.rel (%p614_p2) target bundleno = 2049 (0x801), region = 100  ;;  %3269 = vmatprep.subr.bf16.mxu0 (!%p614_p2), %v3710_v1  ;;  %3275 = vmatprep.mubr.msk.bf16.mxu0 (!%p614_p2), %vm3711_vm0, %v3710_v1  ;;  %s4862_s5 = sld [smem:[#allocation5_spill]] (!%p614_p2)  ;;  %v3663_v42 = vld [vmem:[%s4836_s7] sm:$0xff] (!%p614_p2)   ;;  %v3664_v43 = vld [vmem:[%s4836_s7 + $0x8] sm:$0xff] (!%p614_p2)   ;;  %v3665_v44 = vld [vmem:[%s4836_s7 + $0x10] sm:$0xff] (!%p614_p2)   ;;  %vm1668_vm2 = vcmask (!%p614_p2), 1044480  }
   0xd   : > { %p689_p3 = scmp.lt.s32.totalorder (!%p614_p2), %s688_s0, 135  ;;  %3471 = vset.pattern.permute.xlu0 (!%p614_p2), %v3712_v4  ;;  %3472 = vset.pattern.permute.xlu1 (!%p614_p2), %v3712_v4  ;;  %s4863_s23 = sld [smem:[#allocation2_spill]] (!%p614_p2)  ;;  %v3666_v45 = vld [vmem:[%s4836_s7 + $0x18] sm:$0xff] (!%p614_p2)   ;;  %v3667_v46 = vld [vmem:[%s4836_s7 + $0x20] sm:$0xff] (!%p614_p2)   ;;  %v3668_v47 = vld [vmem:[%s4836_s7 + $0x28] sm:$0xff] (!%p614_p2)   ;;  %vm1396_vm3 = vcmask (!%p614_p2), 1046528  }
   0xe   : > { %2076 = vmatprep.subr.bf16.mxu1 (!%p614_p2), %v3712_v4  ;;  %v3669_v48 = vld [vmem:[%s4836_s7 + $0x30] sm:$0xff] (!%p614_p2)   ;;  %v3670_v49 = vld [vmem:[%s4836_s7 + $0x38] sm:$0xff] (!%p614_p2)   ;;  %v3671_v50 = vld [vmem:[%s4836_s7 + $0x40] sm:$0xff] (!%p614_p2)   ;;  %s3713_s30 = smov (!%p614_p2), 64   ;;  %vm1566_vm4 = vcmask (!%p614_p2), 1045504   ;;  %vm1838_vm5 = vcmask (!%p614_p2), 523264  }
   0xf   : > { %2077 = vmatpush1.bf16.msra.mxu1 (!%p614_p2), %v3663_v42  ;;  %v3672_v51 = vld [vmem:[%s4836_s7 + $0x48] sm:$0xff] (!%p614_p2)   ;;  %v3673_v52 = vld [vmem:[%s4836_s7 + $0x50] sm:$0xff] (!%p614_p2)   ;;  %v3674_v53 = vld [vmem:[%s4836_s7 + $0x58] sm:$0xff] (!%p614_p2)   ;;  %s4864_s22 = sld [smem:[#allocation6_spill]] (!%p614_p2)  ;;  %vm3714_vm6 = vmmov (!%p614_p2), 1   ;;  %vm2285_vm8 = vcmask (!%p614_p2), 105472  }
  0x10   : > { %2078 = vmatprep.subr.bf16.mxu1 (!%p614_p2), %v3712_v4  ;;  %v3675_v54 = vld [vmem:[%s4836_s7 + $0x60] sm:$0xff] (!%p614_p2)   ;;  %v3676_v56 = vld [vmem:[%s4836_s7 + $0x68] sm:$0xff] (!%p614_p2)   ;;  %vm3453_vm7 = vmpackc.low (!%p614_p2), %vm1668_vm2, %vm3714_vm6  ;;  %s4866_s24 = sld [smem:[#allocation3_spill]] (!%p614_p2)  ;;  %vm2460_vm9 = vcmask (!%p614_p2), 1043456   ;;  %vm2456_vm10 = vcmask (!%p614_p2), 64512   ;;  %vm2531_vm11 = vcmask (!%p614_p2), 261120  }
  0x11   : > { %v3643_v0 = vld [vmem:[%s4861_s3] sm:$0xff] (!%p614_p2)   ;;  %v3644_v2 = vld [vmem:[%s4861_s3 + $0x8] sm:$0xff] (!%p614_p2)   ;;  %v3645_v6 = vld [vmem:[%s4861_s3 + $0x10] sm:$0xff] (!%p614_p2)   ;;  %vm2942_vm12 = vcmask (!%p614_p2), 15360   ;;  %vm2955_vm13 = vcmask (!%p614_p2), 7168  }
  0x12   : > { %3270 = vmatpush3.bf16.msra.mxu0 (!%p614_p2), %v3643_v0  ;;  %v1124_v3 = vld [vmem:[%s4862_s5] sm:$0xff] (!%p614_p2)  ;;  %v1126_v5 = vld [vmem:[%s4862_s5 + $0x10] sm:$0xff] (!%p614_p2)  ;;  %v1125_v7 = vld [vmem:[%s4862_s5 + $0x8] sm:$0xff] (!%p614_p2) }
  0x13   : > { %3271 = vmatprep.subr.bf16.mxu0 %v3710_v1  ;;  %1160 = vperm.xlu0 %3471, %v1124_v3   ;;  %s4869_s0 = smov (!%p689_p3, %s688_s0), 135  ;;  %v1127_v8 = vld [vmem:[%s4862_s5 + $0x18] sm:$0xff]  ;;  %v1128_v9 = vld [vmem:[%s4862_s5 + $0x20] sm:$0xff]  ;;  %v1129_v11 = vld [vmem:[%s4862_s5 + $0x28] sm:$0xff] }
  0x14   : > { %1170 = vperm.xlu1 %3472, %v1126_v5   ;;  %s3077_s4 = sshll.u32 %s4869_s0, 2  ;;  %v1130_v12 = vld [vmem:[%s4862_s5 + $0x30] sm:$0xff]  ;;  %v1131_v13 = vld [vmem:[%s4862_s5 + $0x38] sm:$0xff]  ;;  %v1132_v15 = vld [vmem:[%s4862_s5 + $0x40] sm:$0xff]  ;;  %2079 = vmatpush1.bf16.msra.mxu1 %v3664_v43 }
  0x15   : > { %s3867_s25 = scalar_lea.vmem %s4863_s23, %s3077_s4  ;;  %v1133_v16 = vld [vmem:[%s4862_s5 + $0x48] sm:$0xff]  ;;  %v1134_v17 = vld [vmem:[%s4862_s5 + $0x50] sm:$0xff]  ;;  %v1135_v18 = vld [vmem:[%s4862_s5 + $0x58] sm:$0xff]  ;;  %2080 = vmatprep.subr.bf16.mxu1 %v3712_v4  ;;  %s4865_s23 = sadd.s32 4294967295, %s3708_s2  }
  0x16   : > { %3272 = vmatpush3.bf16.msra.mxu0 %v3644_v2  ;;  %v3646_v10 = vld [vmem:[%s3867_s25] sm:$0xff]   ;;  %v3647_v14 = vld [vmem:[%s3867_s25 + $0x8] sm:$0xff]   ;;  %v3648_v20 = vld [vmem:[%s3867_s25 + $0x10] sm:$0xff]   ;;  %s3078_s1 = sshll.u32 %s4865_s23, 1 }
  0x17   : > { %3273 = vmatprep.subr.bf16.mxu0 %v3710_v1  ;;  %1165 = vperm.xlu0 %3471, %v1125_v7   ;;  %v1136_v19 = vld [vmem:[%s4862_s5 + $0x60] sm:$0xff]  ;;  %v1137_v21 = vld [vmem:[%s4862_s5 + $0x68] sm:$0xff]  ;;  %v1138_v22 = vld [vmem:[%s4862_s5 + $0x70] sm:$0xff]  ;;  %p695_p4 = scmp.lt.s32.totalorder %s3078_s1, 7 }
  0x18   : > { %1175 = vperm.xlu1 %3472, %v1127_v8   ;;  %v1139_v23 = vld [vmem:[%s4862_s5 + $0x78] sm:$0xff]  ;;  %v1140_v25 = vld [vmem:[%s4862_s5 + $0x80] sm:$0xff]  ;;  %v1141_v26 = vld [vmem:[%s4862_s5 + $0x88] sm:$0xff]  ;;  %2081 = vmatpush1.bf16.msra.mxu1 %v3665_v44 }
  0x19   : > { %v3649_v24 = vld [vmem:[%s3867_s25 + $0x18] sm:$0xff]   ;;  %v1142_v27 = vld [vmem:[%s4862_s5 + $0x90] sm:$0xff]  ;;  %v3650_v28 = vld [vmem:[%s3867_s25 + $0x20] sm:$0xff]   ;;  %2082 = vmatprep.subr.bf16.mxu1 %v3712_v4  ;;  %s4871_s1 = smov (!%p695_p4, %s3078_s1), 7 }
  0x1a   : > { %3274 = vmatpush3.bf16.msra.mxu0 %v3645_v6  ;;  %v1144_v29 = vld [vmem:[%s4862_s5 + $0xa0] sm:$0xff]  ;;  %v3651_v30 = vld [vmem:[%s3867_s25 + $0x28] sm:$0xff]   ;;  %v3652_v31 = vld [vmem:[%s3867_s25 + $0x30] sm:$0xff]  }
  0x1b   : > { %1180 = vperm.xlu0 %3471, %v1128_v9   ;;  %v3653_v32 = vld [vmem:[%s3867_s25 + $0x38] sm:$0xff]   ;;  %v3654_v33 = vld [vmem:[%s3867_s25 + $0x40] sm:$0xff]   ;;  %v3655_v34 = vld [vmem:[%s3867_s25 + $0x48] sm:$0xff]  }
  0x1c   : > { %1185 = vperm.xlu1 %3472, %v1129_v11   ;;  %v3656_v35 = vld [vmem:[%s3867_s25 + $0x50] sm:$0xff]   ;;  %v3657_v36 = vld [vmem:[%s3867_s25 + $0x58] sm:$0xff]   ;;  %v3658_v37 = vld [vmem:[%s3867_s25 + $0x60] sm:$0xff]   ;;  %2083 = vmatpush1.bf16.msra.mxu1 %v3666_v45 }
  0x1d   : > { %3276 = vmatmul.mubr.msk.bf16.vlgmr.msra.gmra.mrb[0].mxu0 %vm869_vm1, %v3646_v10  ;;  %v3659_v38 = vld [vmem:[%s3867_s25 + $0x68] sm:$0xff]   ;;  %v3660_v39 = vld [vmem:[%s3867_s25 + $0x70] sm:$0xff]   ;;  %v3661_v40 = vld [vmem:[%s3867_s25 + $0x78] sm:$0xff]   ;;  %2084 = vmatprep.subr.bf16.mxu1 %v3712_v4 }
  0x1e   : > { %3279 = vmatprep.mubr.msk.bf16.mxu0 %vm3711_vm0, %v3710_v1  ;;  %v3662_v41 = vld [vmem:[%s3867_s25 + $0x80] sm:$0xff]   ;;  %v3677_v0 = vld [vmem:[%s4836_s7 + $0x70] sm:$0xff]   ;;  %v3678_v6 = vld [vmem:[%s4836_s7 + $0x78] sm:$0xff]   ;;  %s4679_s25 = sshll.u32 %s4871_s1, 3 }
  0x1f   : > { %1190 = vperm.xlu0 %3471, %v1130_v12   ;;  %v4037_v55 = vld [vmem:[%s4835_s6] ss:$0 sm:$0xff]  ;;  %v1143_v43 = vld [vmem:[%s4862_s5 + $0x98] sm:$0xff]  ;;  %v1146_v44 = vld [vmem:[%s4862_s5 + $0xb0] sm:$0xff]  ;;  %s698_s26 = scalar_lea.vmem %s4866_s24, %s4679_s25  ;;  %s4867_s24 = sld [smem:[#allocation4_spill]] }
  0x20   : > { %1195 = vperm.xlu1 %3472, %v1131_v13   ;;  %2085 = vmatpush1.bf16.msra.mxu1 %v3667_v46  ;;  %s710_s29 = scalar_lea.vmem %s4849_s20, %s4679_s25  ;;  %s716_s1 = scalar_lea.vmem %s4850_s21, %s4679_s25 }
  0x21   : > { %2086 = vmatprep.subr.bf16.mxu1 %v3712_v4 }
  0x23   : > { %1200 = vperm.xlu0 %3471, %v1132_v15  }
  0x24   : > { %1205 = vperm.xlu1 %3472, %v1133_v16   ;;  %2087 = vmatpush1.bf16.msra.mxu1 %v3668_v47 }
  0x25   : > { %3280 = vmatmul.mubr.msk.bf16.gmra.mrb[4].mxu0 %vm869_vm1, %v3647_v14  ;;  %2088 = vmatprep.subr.bf16.mxu1 %v3712_v4 }
  0x26   : > { %3283 = vmatprep.mubr.msk.bf16.mxu0 %vm3711_vm0, %v3710_v1 }
  0x27   : > { %1210 = vperm.xlu0 %3471, %v1134_v17  }
  0x28   : > { %1215 = vperm.xlu1 %3472, %v1135_v18   ;;  %2089 = vmatpush1.bf16.msra.mxu1 %v3669_v48 }
  0x29   : > { %2090 = vmatprep.subr.bf16.mxu1 %v3712_v4 }
  0x2b   : > { %1220 = vperm.xlu0 %3471, %v1136_v19  }
  0x2c   : > { %1225 = vperm.xlu1 %3472, %v1137_v21   ;;  %2091 = vmatpush1.bf16.msra.mxu1 %v3670_v49 }
  0x2d   : > { %3284 = vmatmul.mubr.msk.bf16.gmra.mrb[8].mxu0 %vm869_vm1, %v3648_v20  ;;  %2092 = vmatprep.subr.bf16.mxu1 %v3712_v4 }
  0x2e   : > { %3287 = vmatprep.mubr.msk.bf16.mxu0 %vm3711_vm0, %v3710_v1 }
  0x2f   : > { %1230 = vperm.xlu0 %3471, %v1138_v22  }
  0x30   : > { %1235 = vperm.xlu1 %3472, %v1139_v23   ;;  %2093 = vmatpush1.bf16.msra.mxu1 %v3671_v50 }
  0x31   : > { %2094 = vmatprep.subr.bf16.mxu1 %v3712_v4 }
  0x33   : > { %1240 = vperm.xlu0 %3471, %v1140_v25  }
  0x34   : > { %1245 = vperm.xlu1 %3472, %v1141_v26   ;;  %2095 = vmatpush1.bf16.msra.mxu1 %v3672_v51 }
  0x35   : > { %3288 = vmatmul.mubr.msk.bf16.gmra.mrb[12].mxu0 %vm869_vm1, %v3649_v24  ;;  %2096 = vmatprep.subr.bf16.mxu1 %v3712_v4 }
  0x36   : > { %3291 = vmatprep.mubr.msk.bf16.mxu0 %vm3711_vm0, %v3710_v1 }
  0x37   : > { %1250 = vperm.xlu0 %3471, %v1142_v27  }
  0x38   : > { %2097 = vmatpush1.bf16.msra.mxu1 %v3673_v52 }
  0x39   : > { %2098 = vmatprep.subr.bf16.mxu1 %v3712_v4 }
  0x3b   : > { %1260 = vperm.xlu0 %3471, %v1144_v29  }
  0x3c   : > { %2099 = vmatpush1.bf16.msra.mxu1 %v3674_v53 }
  0x3d   : > { %3292 = vmatmul.mubr.msk.bf16.gmra.mrb[16].mxu0 %vm869_vm1, %v3650_v28  ;;  %2100 = vmatprep.subr.bf16.mxu1 %v3712_v4 }
  0x3e   : > { %3295 = vmatprep.mubr.msk.bf16.mxu0 %vm3711_vm0, %v3710_v1 }
  0x40   : > { %2101 = vmatpush1.bf16.msra.mxu1 %v3675_v54 }
  0x41   : > { %2102 = vmatprep.subr.bf16.mxu1 %v3712_v4 }
  0x44   : > { %2103 = vmatpush1.bf16.msra.mxu1 %v3676_v56 }
  0x45   : > { %3296 = vmatmul.mubr.msk.bf16.gmra.mrb[20].mxu0 %vm869_vm1, %v3651_v30  ;;  %2104 = vmatprep.subr.bf16.mxu1 %v3712_v4 }
  0x46   : > { %3299 = vmatprep.mubr.msk.bf16.mxu0 %vm3711_vm0, %v3710_v1 }
  0x48   : > { %2105 = vmatpush1.bf16.msra.mxu1 %v3677_v0 }
  0x49   : > { %2106 = vmatprep.subr.bf16.mxu1 %v3712_v4 }
  0x4c   : > { %2107 = vmatpush1.bf16.msra.mxu1 %v3678_v6  ;;  %v1145_v6 = vld [vmem:[%s4862_s5 + $0xa8] sm:$0xff] }
  0x4d   : > { %3300 = vmatmul.mubr.msk.bf16.gmra.mrb[24].mxu0 %vm869_vm1, %v3652_v31  ;;  %3388 = vmatprep.subr.bf16.mxu1 %v3710_v1 }
  0x4e   : > { %3303 = vmatprep.mubr.msk.bf16.mxu0 %vm3711_vm0, %v3710_v1 }
  0x55   : > { %3304 = vmatmul.mubr.msk.bf16.gmra.mrb[28].mxu0 %vm869_vm1, %v3653_v32 }
  0x56   : > { %3307 = vmatprep.mubr.msk.bf16.mxu0 %vm3711_vm0, %v3710_v1 }
  0x5d   : > { %3308 = vmatmul.mubr.msk.bf16.gmra.mrb[32].mxu0 %vm869_vm1, %v3654_v33 }
  0x5e   : > { %3311 = vmatprep.mubr.msk.bf16.mxu0 %vm3711_vm0, %v3710_v1 }
  0x65   : > { %3312 = vmatmul.mubr.msk.bf16.gmra.mrb[36].mxu0 %vm869_vm1, %v3655_v34 }
  0x66   : > { %3315 = vmatprep.mubr.msk.bf16.mxu0 %vm3711_vm0, %v3710_v1 }
  0x6d   : > { %3316 = vmatmul.mubr.msk.bf16.gmra.mrb[40].mxu0 %vm869_vm1, %v3656_v35 }
  0x6e   : > { %3319 = vmatprep.mubr.msk.bf16.mxu0 %vm3711_vm0, %v3710_v1 }
  0x75   : > { %3320 = vmatmul.mubr.msk.bf16.gmra.mrb[44].mxu0 %vm869_vm1, %v3657_v36 }
  0x76   : > { %3323 = vmatprep.mubr.msk.bf16.mxu0 %vm3711_vm0, %v3710_v1 }
  0x7d   : > { %3324 = vmatmul.mubr.msk.bf16.gmra.mrb[48].mxu0 %vm869_vm1, %v3658_v37 }
  0x7e   : > { %3327 = vmatprep.mubr.msk.bf16.mxu0 %vm3711_vm0, %v3710_v1 }
  0x85   : > { %3328 = vmatmul.mubr.msk.bf16.gmra.mrb[52].mxu0 %vm869_vm1, %v3659_v38 }
  0x86   : > { %3331 = vmatprep.mubr.msk.bf16.mxu0 %vm3711_vm0, %v3710_v1 }
  0x8d   : > { %3332 = vmatmul.mubr.msk.bf16.gmra.mrb[56].mxu0 %vm869_vm1, %v3660_v39 }
  0x8e   : > { %3335 = vmatprep.mubr.msk.bf16.mxu0 %vm3711_vm0, %v3710_v1 }
  0x92   : > { %v1161_v58 = vpop.permute.xlu0 %1160 }
  0x93   : > { %v1171_v9 = vpop.permute.xlu1 %1170 }
  0x95   : > { %3336 = vmatmul.mubr.msk.bf16.gmra.mrb[60].mxu0 %vm869_vm1, %v3661_v40 }
  0x96   : > { %3339 = vmatprep.mubr.msk.bf16.mxu0 %vm3711_vm0, %v3710_v1  ;;  %v1166_v5 = vpop.permute.xlu0 %1165 }
  0x97   : > { %v1176_v21 = vpop.permute.xlu1 %1175 }
  0x9a   : > { %v1181_v39 = vpop.permute.xlu0 %1180 }
  0x9b   : > { %v1186_v46 = vpop.permute.xlu1 %1185 }
  0x9d   : > { %3340 = vmatmul.mubr.msk.bf16.gmra.mrb[64].mxu0 %vm869_vm1, %v3662_v41 }
  0x9e   : > { %v1191_v0 = vpop.permute.xlu0 %1190 }
  0xf0   : > { %v955_v57 = vpop.f32.mrb[0].mxu0 }
  0xf1   : > { %v3277_v59 = vpop.f32.mrb[1].mxu0  ;;  %v956_v60 = vadd.f32 %v4037_v55, %v955_v57 }
  0xf2   : > { %v958_v61 = vpop.f32.mrb[2].mxu0 }
  0xf3   : > { %v959_v62 = vadd.f32 %v4037_v55, %v958_v61  ;;  %v3278_v63 = vpop.f32.mrb[3].mxu0  ;;  %v1090_v3 = vmax.f32 %v956_v60, 0.0 }
  0xf5   : > { %v1091_v2 = vmax.f32 %v959_v62, 0.0  ;;  %v4056_v12 = vmul.f32 %v1161_v58, %v1090_v3 }
  0xf7   : > { %v4052_v7 = vmul.f32 %v1166_v5, %v1091_v2  ;;  %v1669_v20 = vrot.slane %v4056_v12, 3  ;;  %v1397_v23 = vrot.slane %v4056_v12, 1 }
  0xf8   : > { %v963_v8 = vpop.f32.mrb[4].mxu0 }
  0xf9   : > { %v964_v10 = vadd.f32 %v4037_v55, %v963_v8  ;;  %v3281_v11 = vpop.f32.mrb[5].mxu0  ;;  %v1670_v17 = vrot.slane %v4052_v7, 3  ;;  %v1398_v4 = vrot.slane %v4052_v7, 1  ;;  %v1148_v8 = vld [vmem:[%s4862_s5 + $0xc0] sm:$0xff] }
  0xfa   : > { %v966_v13 = vpop.f32.mrb[6].mxu0 }
  0xfb   : > { %v1092_v14 = vmax.f32 %v964_v10, 0.0  ;;  %v967_v15 = vadd.f32 %v4037_v55, %v966_v13  ;;  %v3282_v16 = vpop.f32.mrb[7].mxu0  ;;  %v1671_v27 = vsel %vm1668_vm2, %v1669_v20, %v1670_v17  ;;  %v1399_v31 = vsel %vm1396_vm3, %v1397_v23, %v1398_v4  ;;  %v1196_v10 = vpop.permute.xlu1 %1195 }
  0xfd   : > { %v4061_v18 = vmul.f32 %v1171_v9, %v1092_v14  ;;  %v1093_v19 = vmax.f32 %v967_v15, 0.0 }
  0xff   : > { %v1672_v22 = vrot.slane %v4061_v18, 3  ;;  %v1400_v24 = vrot.slane %v4061_v18, 1  ;;  %v4068_v25 = vmul.f32 %v1176_v21, %v1093_v19 }
 0x100   : > { %v971_v26 = vpop.f32.mrb[8].mxu0 }
 0x101   : > { %v972_v28 = vadd.f32 %v4037_v55, %v971_v26  ;;  %v3285_v29 = vpop.f32.mrb[9].mxu0  ;;  %v1673_v30 = vsel %vm1668_vm2, %v1670_v17, %v1672_v22  ;;  %v1401_v32 = vsel %vm1396_vm3, %v1398_v4, %v1400_v24  ;;  %v1674_v40 = vrot.slane %v4068_v25, 3 }
 0x102   : > { %v974_v33 = vpop.f32.mrb[10].mxu0  ;;  %v3473_v34 = vpack.i.bf16 %v1673_v30, %v1671_v27  ;;  %v3478_v35 = vpack.i.bf16 %v1401_v32, %v1399_v31  ;;  %v1402_v45 = vrot.slane %v4068_v25, 1  ;;  %v1201_v29 = vpop.permute.xlu0 %1200 }
 0x103   : > { %v1094_v36 = vmax.f32 %v972_v28, 0.0  ;;  %v975_v37 = vadd.f32 %v4037_v55, %v974_v33  ;;  %v3286_v38 = vpop.f32.mrb[11].mxu0  ;;  %v1675_v51 = vsel %vm1668_vm2, %v1672_v22, %v1674_v40  ;;  %v1147_v33 = vld [vmem:[%s4862_s5 + $0xb8] sm:$0xff] }
 0x104   : > { %3474 = vrot.lane.b32.xlu1 %v3473_v34, %s3713_s30  ;;  %3479 = vrot.lane.b32.xlu0 %v3478_v35, %s3713_s30  ;;  %v1403_v56 = vsel %vm1396_vm3, %v1400_v24, %v1402_v45  ;;  %v1150_v34 = vld [vmem:[%s4862_s5 + $0xd0] sm:$0xff] }
 0x105   : > { %v4079_v41 = vmul.f32 %v1181_v39, %v1094_v36  ;;  %v1095_v42 = vmax.f32 %v975_v37, 0.0  ;;  %v1206_v36 = vpop.permute.xlu1 %1205 }
 0x107   : > { %v1676_v47 = vrot.slane %v4079_v41, 3  ;;  %v1404_v48 = vrot.slane %v4079_v41, 1  ;;  %v4090_v49 = vmul.f32 %v1186_v46, %v1095_v42 }
 0x108   : > { %1255 = vperm.xlu1 %3472, %v1143_v43   ;;  %1270 = vperm.xlu0 %3471, %v1146_v44   ;;  %v979_v50 = vpop.f32.mrb[12].mxu0 }
 0x109   : > { %v980_v52 = vadd.f32 %v4037_v55, %v979_v50  ;;  %v3289_v53 = vpop.f32.mrb[13].mxu0  ;;  %v1677_v54 = vsel %vm1668_vm2, %v1674_v40, %v1676_v47  ;;  %v1405_v57 = vsel %vm1396_vm3, %v1402_v45, %v1404_v48  ;;  %v1678_v2 = vrot.slane %v4090_v49, 3 }
 0x10a   : > { %v982_v58 = vpop.f32.mrb[14].mxu0  ;;  %v3483_v59 = vpack.i.bf16 %v1677_v54, %v1675_v51  ;;  %v3488_v60 = vpack.i.bf16 %v1405_v57, %v1403_v56  ;;  %v1406_v9 = vrot.slane %v4090_v49, 1  ;;  %v1211_v56 = vpop.permute.xlu0 %1210 }
 0x10b   : > { %v1096_v61 = vmax.f32 %v980_v52, 0.0  ;;  %v983_v62 = vadd.f32 %v4037_v55, %v982_v58  ;;  %v3290_v63 = vpop.f32.mrb[15].mxu0  ;;  %v1679_v16 = vsel %vm1668_vm2, %v1676_v47, %v1678_v2 }
 0x10c   : > { %3484 = vrot.lane.b32.xlu1 %v3483_v59, %s3713_s30  ;;  %3489 = vrot.lane.b32.xlu0 %v3488_v60, %s3713_s30  ;;  %v1407_v20 = vsel %vm1396_vm3, %v1404_v48, %v1406_v9  ;;  %v1149_v60 = vld [vmem:[%s4862_s5 + $0xc8] sm:$0xff]  ;;  %v1216_v63 = vpop.permute.xlu1 %1215 }
 0x10d   : > { %v4101_v3 = vmul.f32 %v1191_v0, %v1096_v61  ;;  %v1097_v5 = vmax.f32 %v983_v62, 0.0  ;;  %v1152_v61 = vld [vmem:[%s4862_s5 + $0xe0] sm:$0xff] }
 0x10f   : > { %v1680_v11 = vrot.slane %v4101_v3, 3  ;;  %v1408_v13 = vrot.slane %v4101_v3, 1  ;;  %v4112_v14 = vmul.f32 %v1196_v10, %v1097_v5 }
 0x110   : > { %1265 = vperm.xlu1 %3472, %v1145_v6   ;;  %1280 = vperm.xlu0 %3471, %v1148_v8   ;;  %v987_v15 = vpop.f32.mrb[16].mxu0 }
 0x111   : > { %v988_v17 = vadd.f32 %v4037_v55, %v987_v15  ;;  %v3293_v19 = vpop.f32.mrb[17].mxu0  ;;  %v1681_v4 = vsel %vm1668_vm2, %v1678_v2, %v1680_v11  ;;  %v1409_v21 = vsel %vm1396_vm3, %v1406_v9, %v1408_v13  ;;  %v1682_v30 = vrot.slane %v4112_v14, 3 }
 0x112   : > { %v990_v22 = vpop.f32.mrb[18].mxu0  ;;  %v3493_v23 = vpack.i.bf16 %v1681_v4, %v1679_v16  ;;  %v3498_v24 = vpack.i.bf16 %v1409_v21, %v1407_v20  ;;  %v1410_v35 = vrot.slane %v4112_v14, 1 }
 0x113   : > { %v1098_v26 = vmax.f32 %v988_v17, 0.0  ;;  %v991_v27 = vadd.f32 %v4037_v55, %v990_v22  ;;  %v3294_v28 = vpop.f32.mrb[19].mxu0  ;;  %v1683_v42 = vsel %vm1668_vm2, %v1680_v11, %v1682_v30  ;;  %v1221_v22 = vpop.permute.xlu0 %1220 }
 0x114   : > { %3494 = vrot.lane.b32.xlu1 %v3493_v23, %s3713_s30  ;;  %3499 = vrot.lane.b32.xlu0 %v3498_v24, %s3713_s30  ;;  %v1411_v46 = vsel %vm1396_vm3, %v1408_v13, %v1410_v35  ;;  %v1154_v28 = vld [vmem:[%s4862_s5 + $0xf0] sm:$0xff] }
 0x115   : > { %v4123_v31 = vmul.f32 %v1201_v29, %v1098_v26  ;;  %v1099_v32 = vmax.f32 %v991_v27, 0.0  ;;  %v1151_v27 = vld [vmem:[%s4862_s5 + $0xd8] sm:$0xff] }
 0x117   : > { %v1684_v37 = vrot.slane %v4123_v31, 3  ;;  %v1412_v38 = vrot.slane %v4123_v31, 1  ;;  %v4134_v39 = vmul.f32 %v1206_v36, %v1099_v32 }
 0x118   : > { %1275 = vperm.xlu1 %3472, %v1147_v33   ;;  %1290 = vperm.xlu0 %3471, %v1150_v34   ;;  %v995_v40 = vpop.f32.mrb[20].mxu0 }
 0x119   : > { %v996_v43 = vadd.f32 %v4037_v55, %v995_v40  ;;  %v3297_v44 = vpop.f32.mrb[21].mxu0  ;;  %v1685_v45 = vsel %vm1668_vm2, %v1682_v30, %v1684_v37  ;;  %v1413_v47 = vsel %vm1396_vm3, %v1410_v35, %v1412_v38  ;;  %v1686_v57 = vrot.slane %v4134_v39, 3  ;;  %v1226_v30 = vpop.permute.xlu1 %1225 }
 0x11a   : > { %v998_v48 = vpop.f32.mrb[22].mxu0  ;;  %v3503_v50 = vpack.i.bf16 %v1685_v45, %v1683_v42  ;;  %v3508_v51 = vpack.i.bf16 %v1413_v47, %v1411_v46  ;;  %v1414_v62 = vrot.slane %v4134_v39, 1 }
 0x11b   : > { %v1100_v52 = vmax.f32 %v996_v43, 0.0  ;;  %v999_v53 = vadd.f32 %v4037_v55, %v998_v48  ;;  %v3298_v54 = vpop.f32.mrb[23].mxu0  ;;  %v1687_v8 = vsel %vm1668_vm2, %v1684_v37, %v1686_v57 }
 0x11c   : > { %3504 = vrot.lane.b32.xlu1 %v3503_v50, %s3713_s30  ;;  %3509 = vrot.lane.b32.xlu0 %v3508_v51, %s3713_s30  ;;  %v1415_v13 = vsel %vm1396_vm3, %v1412_v38, %v1414_v62  ;;  %v1231_v51 = vpop.permute.xlu0 %1230 }
 0x11d   : > { %v4145_v58 = vmul.f32 %v1211_v56, %v1100_v52  ;;  %v1101_v59 = vmax.f32 %v999_v53, 0.0  ;;  %v1153_v56 = vld [vmem:[%s4862_s5 + $0xe8] sm:$0xff] }
 0x11f   : > { %v1688_v0 = vrot.slane %v4145_v58, 3  ;;  %v1416_v2 = vrot.slane %v4145_v58, 1  ;;  %v4156_v5 = vmul.f32 %v1216_v63, %v1101_v59  ;;  %v1236_v59 = vpop.permute.xlu1 %1235 }
 0x120   : > { %1285 = vperm.xlu1 %3472, %v1149_v60   ;;  %1300 = vperm.xlu0 %3471, %v1152_v61   ;;  %v1003_v6 = vpop.f32.mrb[24].mxu0 }
 0x121   : > { %v1004_v9 = vadd.f32 %v4037_v55, %v1003_v6  ;;  %v3301_v10 = vpop.f32.mrb[25].mxu0  ;;  %v1689_v11 = vsel %vm1668_vm2, %v1686_v57, %v1688_v0  ;;  %v1417_v15 = vsel %vm1396_vm3, %v1414_v62, %v1416_v2  ;;  %v1690_v23 = vrot.slane %v4156_v5, 3 }
 0x122   : > { %v1006_v16 = vpop.f32.mrb[26].mxu0  ;;  %v3513_v17 = vpack.i.bf16 %v1689_v11, %v1687_v8  ;;  %v3518_v19 = vpack.i.bf16 %v1417_v15, %v1415_v13  ;;  %v1418_v29 = vrot.slane %v4156_v5, 1 }
 0x123   : > { %v1102_v4 = vmax.f32 %v1004_v9, 0.0  ;;  %v1007_v20 = vadd.f32 %v4037_v55, %v1006_v16  ;;  %v3302_v21 = vpop.f32.mrb[27].mxu0  ;;  %v1691_v36 = vsel %vm1668_vm2, %v1688_v0, %v1690_v23 }
 0x124   : > { %3514 = vrot.lane.b32.xlu1 %v3513_v17, %s3713_s30  ;;  %3519 = vrot.lane.b32.xlu0 %v3518_v19, %s3713_s30  ;;  %v1419_v42 = vsel %vm1396_vm3, %v1416_v2, %v1418_v29 }
 0x125   : > { %v4167_v24 = vmul.f32 %v1221_v22, %v1102_v4  ;;  %v1103_v26 = vmax.f32 %v1007_v20, 0.0  ;;  %v1241_v4 = vpop.permute.xlu0 %1240 }
 0x127   : > { %v1692_v32 = vrot.slane %v4167_v24, 3  ;;  %v1420_v33 = vrot.slane %v4167_v24, 1  ;;  %v4178_v34 = vmul.f32 %v1226_v30, %v1103_v26  ;;  %v1155_v26 = vld [vmem:[%s4862_s5 + $0xf8] sm:$0xff]  ;;  %v1246_v30 = vpop.permute.xlu1 %1245 }
 0x128   : > { %1295 = vperm.xlu1 %3472, %v1151_v27   ;;  %1310 = vperm.xlu0 %3471, %v1154_v28   ;;  %v1011_v35 = vpop.f32.mrb[28].mxu0  ;;  %v1156_v27 = vld [vmem:[%s4862_s5 + $0x100] sm:$0xff] }
 0x129   : > { %v1012_v37 = vadd.f32 %v4037_v55, %v1011_v35  ;;  %v3305_v38 = vpop.f32.mrb[29].mxu0  ;;  %v1693_v40 = vsel %vm1668_vm2, %v1690_v23, %v1692_v32  ;;  %v1421_v43 = vsel %vm1396_vm3, %v1418_v29, %v1420_v33  ;;  %v1694_v52 = vrot.slane %v4178_v34, 3 }
 0x12a   : > { %v1014_v44 = vpop.f32.mrb[30].mxu0  ;;  %v3523_v45 = vpack.i.bf16 %v1693_v40, %v1691_v36  ;;  %v3528_v46 = vpack.i.bf16 %v1421_v43, %v1419_v42  ;;  %v1422_v57 = vrot.slane %v4178_v34, 1 }
 0x12b   : > { %v1104_v47 = vmax.f32 %v1012_v37, 0.0  ;;  %v1015_v48 = vadd.f32 %v4037_v55, %v1014_v44  ;;  %v3306_v50 = vpop.f32.mrb[31].mxu0  ;;  %v1695_v0 = vsel %vm1668_vm2, %v1692_v32, %v1694_v52 }
 0x12c   : > { %3524 = vrot.lane.b32.xlu1 %v3523_v45, %s3713_s30  ;;  %3529 = vrot.lane.b32.xlu0 %v3528_v46, %s3713_s30  ;;  %v1423_v9 = vsel %vm1396_vm3, %v1420_v33, %v1422_v57 }
 0x12d   : > { %v4189_v53 = vmul.f32 %v1231_v51, %v1104_v47  ;;  %v1105_v54 = vmax.f32 %v1015_v48, 0.0  ;;  %v1251_v48 = vpop.permute.xlu0 %1250  ;;  %v1157_v51 = vld [vmem:[%s4862_s5 + $0x108] sm:$0xff] }
 0x12f   : > { %v1696_v60 = vrot.slane %v4189_v53, 3  ;;  %v1424_v61 = vrot.slane %v4189_v53, 1  ;;  %v4197_v62 = vmul.f32 %v1236_v59, %v1105_v54 }
 0x130   : > { %1305 = vperm.xlu1 %3472, %v1153_v56   ;;  %v1019_v63 = vpop.f32.mrb[32].mxu0 }
 0x131   : > { %v1020_v2 = vadd.f32 %v4037_v55, %v1019_v63  ;;  %v3309_v6 = vpop.f32.mrb[33].mxu0  ;;  %v1697_v8 = vsel %vm1668_vm2, %v1694_v52, %v1696_v60  ;;  %v1425_v10 = vsel %vm1396_vm3, %v1422_v57, %v1424_v61  ;;  %v1698_v20 = vrot.slane %v4197_v62, 3 }
 0x132   : > { %v1022_v11 = vpop.f32.mrb[34].mxu0  ;;  %v3533_v13 = vpack.i.bf16 %v1697_v8, %v1695_v0  ;;  %v3538_v15 = vpack.i.bf16 %v1425_v10, %v1423_v9  ;;  %v1426_v21 = vrot.slane %v4197_v62, 1 }
 0x133   : > { %v1106_v16 = vmax.f32 %v1020_v2, 0.0  ;;  %v1023_v17 = vadd.f32 %v4037_v55, %v1022_v11  ;;  %v3310_v19 = vpop.f32.mrb[35].mxu0  ;;  %v1699_v33 = vsel %vm1668_vm2, %v1696_v60, %v1698_v20 }
 0x134   : > { %3534 = vrot.lane.b32.xlu1 %v3533_v13, %s3713_s30  ;;  %3539 = vrot.lane.b32.xlu0 %v3538_v15, %s3713_s30  ;;  %v1427_v35 = vsel %vm1396_vm3, %v1424_v61, %v1426_v21 }
 0x135   : > { %v4209_v22 = vmul.f32 %v1241_v4, %v1106_v16  ;;  %v1107_v23 = vmax.f32 %v1023_v17, 0.0 }
 0x137   : > { %v1700_v28 = vrot.slane %v4209_v22, 3  ;;  %v1428_v29 = vrot.slane %v4209_v22, 1  ;;  %v4221_v36 = vmul.f32 %v1246_v30, %v1107_v23 }
 0x138   : > { %1315 = vperm.xlu1 %3472, %v1155_v26   ;;  %1320 = vperm.xlu0 %3471, %v1156_v27   ;;  %v1027_v32 = vpop.f32.mrb[36].mxu0 }
 0x139   : > { %v1028_v37 = vadd.f32 %v4037_v55, %v1027_v32  ;;  %v1701_v38 = vsel %vm1668_vm2, %v1698_v20, %v1700_v28  ;;  %v1429_v40 = vsel %vm1396_vm3, %v1426_v21, %v1428_v29  ;;  %v3313_v42 = vpop.f32.mrb[37].mxu0  ;;  %v1702_v52 = vrot.slane %v4221_v36, 3 }
 0x13a   : > { %v3543_v43 = vpack.i.bf16 %v1701_v38, %v1699_v33  ;;  %v3548_v44 = vpack.i.bf16 %v1429_v40, %v1427_v35  ;;  %v4226_v45 = vpop.f32.mrb[38].mxu0  ;;  %v1430_v54 = vrot.slane %v4221_v36, 1 }
 0x13b   : > { %v1108_v46 = vmax.f32 %v1028_v37, 0.0  ;;  %v3314_v47 = vpop.f32.mrb[39].mxu0  ;;  %v1703_v60 = vsel %vm1668_vm2, %v1700_v28, %v1702_v52 }
 0x13c   : > { %3544 = vrot.lane.b32.xlu1 %v3543_v43, %s3713_s30  ;;  %3549 = vrot.lane.b32.xlu0 %v3548_v44, %s3713_s30  ;;  %v1431_v63 = vsel %vm1396_vm3, %v1428_v29, %v1430_v54  ;;  %v1261_v43 = vpop.permute.xlu0 %1260  ;;  %v1568_v47 = vrot.slane %v4052_v7, 2 }
 0x13d   : > { %v4230_v50 = vmul.f32 %v1251_v48, %v1108_v46  ;;  %v1570_v48 = vrot.slane %v4061_v18, 2 }
 0x13f   : > { %v1704_v56 = vrot.slane %v4230_v50, 3  ;;  %v1432_v57 = vrot.slane %v4230_v50, 1 }
 0x140   : > { %1325 = vperm.xlu1 %3472, %v1157_v51   ;;  %v1035_v59 = vpop.f32.mrb[40].mxu0 }
 0x141   : > { %v1705_v61 = vsel %vm1668_vm2, %v1702_v52, %v1704_v56  ;;  %v1433_v0 = vsel %vm1396_vm3, %v1430_v54, %v1432_v57  ;;  %v3317_v2 = vpop.f32.mrb[41].mxu0  ;;  %v1567_v54 = vrot.slane %v4056_v12, 2 }
 0x142   : > { %v3553_v6 = vpack.i.bf16 %v1705_v61, %v1703_v60  ;;  %v3558_v8 = vpack.i.bf16 %v1433_v0, %v1431_v63  ;;  %v1038_v9 = vpop.f32.mrb[42].mxu0 }
 0x143   : > { %v3318_v10 = vpop.f32.mrb[43].mxu0  ;;  %v1569_v2 = vsel %vm1566_vm4, %v1567_v54, %v1568_v47 }
 0x144   : > { %3554 = vrot.lane.b32.xlu0 %v3553_v6, %s3713_s30  ;;  %3559 = vrot.lane.b32.xlu1 %v3558_v8, %s3713_s30  ;;  %v1571_v6 = vsel %vm1566_vm4, %v1568_v47, %v1570_v48 }
 0x148   : > { %v1043_v11 = vpop.f32.mrb[44].mxu0 }
 0x149   : > { %v3321_v13 = vpop.f32.mrb[45].mxu0 }
 0x14a   : > { %v4249_v15 = vpop.f32.mrb[46].mxu0 }
 0x14b   : > { %v3322_v16 = vpop.f32.mrb[47].mxu0 }
 0x150   : > { %v4251_v17 = vpop.f32.mrb[48].mxu0 }
 0x151   : > { %v3325_v19 = vpop.f32.mrb[49].mxu0 }
 0x152   : > { %v4253_v4 = vpop.f32.mrb[50].mxu0 }
 0x153   : > { %v3326_v20 = vpop.f32.mrb[51].mxu0 }
 0x158   : > { %v4255_v21 = vpop.f32.mrb[52].mxu0 }
 0x159   : > { %v3329_v23 = vpop.f32.mrb[53].mxu0 }
 0x15a   : > { %v4257_v26 = vpop.f32.mrb[54].mxu0  ;;  %v1036_v23 = vadd.f32 %v4037_v55, %v1035_v59  ;;  %v1576_v59 = vrot.slane %v4090_v49, 2 }
 0x15b   : > { %v3330_v27 = vpop.f32.mrb[55].mxu0 }
 0x15c   : > { %v1031_v27 = vadd.f32 %v4037_v55, %v4226_v45  ;;  %v1578_v45 = vrot.slane %v4101_v3, 2 }
 0x160   : > { %v4259_v28 = vpop.f32.mrb[56].mxu0 }
 0x161   : > { %v3333_v29 = vpop.f32.mrb[57].mxu0 }
 0x162   : > { %v4261_v30 = vpop.f32.mrb[58].mxu0  ;;  %v1110_v29 = vmax.f32 %v1036_v23, 0.0 }
 0x163   : > { %v3334_v32 = vpop.f32.mrb[59].mxu0 }
 0x164   : > { %v1572_v32 = vrot.slane %v4068_v25, 2 }
 0x168   : > { %v4263_v33 = vpop.f32.mrb[60].mxu0 }
 0x169   : > { %v3337_v35 = vpop.f32.mrb[61].mxu0 }
 0x16a   : > { %v4265_v37 = vpop.f32.mrb[62].mxu0  ;;  %v1574_v35 = vrot.slane %v4079_v41, 2 }
 0x16b   : > { %v3338_v38 = vpop.f32.mrb[63].mxu0 }
 0x16c   : > { %v1109_v38 = vmax.f32 %v1031_v27, 0.0  ;;  %v1575_v54 = vsel %vm1566_vm4, %v1572_v32, %v1574_v35 }
 0x170   : > { %v4267_v40 = vpop.f32.mrb[64].mxu0 }
 0x171   : > { %v3341_v42 = vpop.f32.mrb[65].mxu0 }
 0x172   : > { %v4269_v44 = vpop.f32.mrb[66].mxu0  ;;  %v4287_v42 = vmul.f32 %v1261_v43, %v1110_v29 }
 0x173   : > { %v3342_v46 = vpop.f32.mrb[67].mxu0 }
 0x176   : > { %v3475_v51 = vpop.permute.xlu1 %3474  ;;  %v3480_v52 = vpop.permute.xlu0 %3479 }
 0x177   : > { %v3477_v60 = vunpack.i.h.bf16 %v3475_v51  ;;  %v3476_v61 = vunpack.i.l.bf16 %v3475_v51  ;;  %v3482_v63 = vunpack.i.h.bf16 %v3480_v52  ;;  %v3481_v0 = vunpack.i.l.bf16 %v3480_v52 }
 0x178   : > { %v1573_v52 = vsel %vm1566_vm4, %v1570_v48, %v1572_v32  ;;  %v1436_v48 = vrot.slane %v4287_v42, 1 }
 0x179   : > { %v1873_v8 = vsel %vm1838_vm5, %v1569_v2, %v3476_v61  ;;  %v1874_v10 = vsel %vm1838_vm5, %v1571_v6, %v3477_v60  ;;  %v1839_v13 = vsel %vm1838_vm5, %v4056_v12, %v3481_v0  ;;  %v1840_v16 = vsel %vm1838_vm5, %v4052_v7, %v3482_v63 }
 0x17a   : > { %v1908_v19 = vpack.c.bf16 %v1874_v10, %v1873_v8  ;;  %v1907_v20 = vpack.c.bf16 %v1840_v16, %v1839_v13  ;;  %v1039_v12 = vadd.f32 %v4037_v55, %v1038_v9  ;;  %v1044_v7 = vadd.f32 %v4037_v55, %v1043_v11 }
 0x17b   : > { %v1708_v9 = vrot.slane %v4287_v42, 3  ;;  %v1047_v63 = vadd.f32 %v4037_v55, %v4249_v15  ;;  %v1052_v6 = vadd.f32 %v4037_v55, %v4251_v17 }
 0x17c   : > { %2108 = vmatprep.mubr.bf16.mxu1 %v1908_v19  ;;  %v1111_v60 = vmax.f32 %v1039_v12, 0.0  ;;  %v1112_v11 = vmax.f32 %v1044_v7, 0.0 }
 0x17d   : > { %2109 = vmatmul.mubr.bf16.vlgmr.msra.gmra.mrb[0].mxu1 %v1907_v20 }
 0x187   : > { %v1256_v46 = vpop.permute.xlu1 %1255  ;;  %v1271_v47 = vpop.permute.xlu0 %1270 }
 0x188   : > { %v4291_v51 = vmul.f32 %v1256_v46, %v1109_v38  ;;  %v4315_v38 = vmul.f32 %v1271_v47, %v1112_v11  ;;  %v1582_v47 = vrot.slane %v4123_v31, 2  ;;  %v1113_v11 = vmax.f32 %v1047_v63, 0.0 }
 0x18a   : > { %v1434_v43 = vrot.slane %v4291_v51, 1  ;;  %v1706_v61 = vrot.slane %v4291_v51, 3 }
 0x18b   : > { %v3485_v0 = vpop.permute.xlu1 %3484  ;;  %v3490_v2 = vpop.permute.xlu0 %3489 }
 0x18c   : > { %v3487_v8 = vunpack.i.h.bf16 %v3485_v0  ;;  %v3486_v10 = vunpack.i.l.bf16 %v3485_v0  ;;  %v3492_v13 = vunpack.i.h.bf16 %v3490_v2  ;;  %v3491_v16 = vunpack.i.l.bf16 %v3490_v2 }
 0x18d   : > { %v1707_v19 = vsel %vm1668_vm2, %v1704_v56, %v1706_v61  ;;  %v1709_v20 = vsel %vm1668_vm2, %v1706_v61, %v1708_v9  ;;  %v1435_v15 = vsel %vm1396_vm3, %v1432_v57, %v1434_v43  ;;  %v1437_v23 = vsel %vm1396_vm3, %v1434_v43, %v1436_v48 }
 0x18e   : > { %v3563_v27 = vpack.i.bf16 %v1709_v20, %v1707_v19  ;;  %v3568_v17 = vpack.i.bf16 %v1437_v23, %v1435_v15  ;;  %v1875_v29 = vsel %vm1838_vm5, %v1573_v52, %v3486_v10  ;;  %v1876_v32 = vsel %vm1838_vm5, %v1575_v54, %v3487_v8 }
 0x18f   : > { %v1266_v12 = vpop.permute.xlu1 %1265  ;;  %v1281_v7 = vpop.permute.xlu0 %1280  ;;  %v1910_v46 = vpack.c.bf16 %v1876_v32, %v1875_v29  ;;  %v1841_v56 = vsel %vm1838_vm5, %v4061_v18, %v3491_v16  ;;  %v1842_v61 = vsel %vm1838_vm5, %v4068_v25, %v3492_v13  ;;  %v1580_v54 = vrot.slane %v4112_v14, 2 }
 0x190   : > { %v4321_v57 = vmul.f32 %v1266_v12, %v1111_v60  ;;  %3564 = vrot.lane.b32.xlu0 %v3563_v27, %s3713_s30  ;;  %3569 = vrot.lane.b32.xlu1 %v3568_v17, %s3713_s30  ;;  %v1909_v52 = vpack.c.bf16 %v1842_v61, %v1841_v56  ;;  %v1577_v43 = vsel %vm1566_vm4, %v1574_v35, %v1576_v59  ;;  %v1114_v25 = vmax.f32 %v1052_v6, 0.0 }
 0x191   : > { %2116 = vmatprep.mubr.bf16.mxu1 %v1910_v46  ;;  %v1579_v18 = vsel %vm1566_vm4, %v1576_v59, %v1578_v45  ;;  %v1440_v2 = vrot.slane %v4315_v38, 1  ;;  %v1712_v8 = vrot.slane %v4315_v38, 3  ;;  %v1055_v10 = vadd.f32 %v4037_v55, %v4253_v4 }
 0x192   : > { %v1438_v60 = vrot.slane %v4321_v57, 1  ;;  %v1710_v0 = vrot.slane %v4321_v57, 3  ;;  %2117 = vmatmul.mubr.bf16.gmra.mrb[4].mxu1 %v1909_v52  ;;  %v1060_v16 = vadd.f32 %v4037_v55, %v4255_v21  ;;  %v4345_v12 = vmul.f32 %v1281_v7, %v1114_v25 }
 0x193   : > { %v3495_v13 = vpop.permute.xlu1 %3494  ;;  %v3500_v35 = vpop.permute.xlu0 %3499  ;;  %v1581_v7 = vsel %vm1566_vm4, %v1578_v45, %v1580_v54  ;;  %v1115_v25 = vmax.f32 %v1055_v10, 0.0 }
 0x194   : > { %v3497_v59 = vunpack.i.h.bf16 %v3495_v13  ;;  %v3496_v63 = vunpack.i.l.bf16 %v3495_v13  ;;  %v3502_v6 = vunpack.i.h.bf16 %v3500_v35  ;;  %v3501_v19 = vunpack.i.l.bf16 %v3500_v35 }
 0x195   : > { %v1711_v20 = vsel %vm1668_vm2, %v1708_v9, %v1710_v0  ;;  %v1713_v15 = vsel %vm1668_vm2, %v1710_v0, %v1712_v8  ;;  %v1439_v23 = vsel %vm1396_vm3, %v1436_v48, %v1438_v60  ;;  %v1441_v27 = vsel %vm1396_vm3, %v1438_v60, %v1440_v2 }
 0x196   : > { %v3573_v17 = vpack.i.bf16 %v1713_v15, %v1711_v20  ;;  %v3578_v29 = vpack.i.bf16 %v1441_v27, %v1439_v23  ;;  %v1877_v4 = vsel %vm1838_vm5, %v1577_v43, %v3496_v63  ;;  %v1878_v32 = vsel %vm1838_vm5, %v1579_v18, %v3497_v59 }
 0x197   : > { %v1276_v21 = vpop.permute.xlu1 %1275  ;;  %v1291_v46 = vpop.permute.xlu0 %1290  ;;  %v1912_v56 = vpack.c.bf16 %v1878_v32, %v1877_v4  ;;  %v1843_v9 = vsel %vm1838_vm5, %v4079_v41, %v3501_v19  ;;  %v1844_v61 = vsel %vm1838_vm5, %v4090_v49, %v3502_v6  ;;  %v1584_v43 = vrot.slane %v4134_v39, 2 }
 0x198   : > { %v4351_v48 = vmul.f32 %v1276_v21, %v1113_v11  ;;  %3574 = vrot.lane.b32.xlu0 %v3573_v17, %s3713_s30  ;;  %3579 = vrot.lane.b32.xlu1 %v3578_v29, %s3713_s30  ;;  %v1911_v52 = vpack.c.bf16 %v1844_v61, %v1843_v9  ;;  %v1586_v18 = vrot.slane %v4145_v58, 2  ;;  %v1583_v41 = vsel %vm1566_vm4, %v1580_v54, %v1582_v47 }
 0x199   : > { %2124 = vmatprep.mubr.bf16.mxu1 %v1912_v56  ;;  %v1116_v49 = vmax.f32 %v1060_v16, 0.0  ;;  %v4367_v0 = vadd.f32 %v4037_v55, %v4257_v26  ;;  %v1444_v45 = vrot.slane %v4345_v12, 1  ;;  %v1716_v13 = vrot.slane %v4345_v12, 3 }
 0x19a   : > { %v1442_v11 = vrot.slane %v4351_v48, 1  ;;  %v1714_v60 = vrot.slane %v4351_v48, 3  ;;  %2125 = vmatmul.mubr.bf16.gmra.mrb[8].mxu1 %v1911_v52  ;;  %v1068_v59 = vadd.f32 %v4037_v55, %v4259_v28  ;;  %v4375_v54 = vadd.f32 %v4037_v55, %v4263_v33 }
 0x19b   : > { %v3505_v10 = vpop.permute.xlu1 %3504  ;;  %v3510_v35 = vpop.permute.xlu0 %3509  ;;  %v4383_v33 = vmul.f32 %v1291_v46, %v1116_v49  ;;  %v1588_v61 = vrot.slane %v4156_v5, 2  ;;  %v1590_v46 = vrot.slane %v4167_v24, 2  ;;  %v1585_v52 = vsel %vm1566_vm4, %v1582_v47, %v1584_v43 }
 0x19c   : > { %v3507_v16 = vunpack.i.h.bf16 %v3505_v10  ;;  %v3506_v63 = vunpack.i.l.bf16 %v3505_v10  ;;  %v3512_v6 = vunpack.i.h.bf16 %v3510_v35  ;;  %v3511_v19 = vunpack.i.l.bf16 %v3510_v35 }
 0x19d   : > { %v1715_v26 = vsel %vm1668_vm2, %v1712_v8, %v1714_v60  ;;  %v1717_v20 = vsel %vm1668_vm2, %v1714_v60, %v1716_v13  ;;  %v1443_v15 = vsel %vm1396_vm3, %v1440_v2, %v1442_v11  ;;  %v1445_v23 = vsel %vm1396_vm3, %v1442_v11, %v1444_v45 }
 0x19e   : > { %v3583_v27 = vpack.i.bf16 %v1717_v20, %v1715_v26  ;;  %v3588_v17 = vpack.i.bf16 %v1445_v23, %v1443_v15  ;;  %v1879_v28 = vsel %vm1838_vm5, %v1581_v7, %v3506_v63  ;;  %v1880_v29 = vsel %vm1838_vm5, %v1583_v41, %v3507_v16 }
 0x19f   : > { %v1286_v4 = vpop.permute.xlu1 %1285  ;;  %v1301_v32 = vpop.permute.xlu0 %1300  ;;  %v1914_v21 = vpack.c.bf16 %v1880_v29, %v1879_v28  ;;  %v1845_v8 = vsel %vm1838_vm5, %v4101_v3, %v3511_v19  ;;  %v1846_v56 = vsel %vm1838_vm5, %v4112_v14, %v3512_v6  ;;  %v1587_v3 = vsel %vm1566_vm4, %v1584_v43, %v1586_v18 }
 0x1a0   : > { %v4389_v2 = vmul.f32 %v1286_v4, %v1115_v25  ;;  %3584 = vrot.lane.b32.xlu0 %v3583_v27, %s3713_s30  ;;  %3589 = vrot.lane.b32.xlu1 %v3588_v17, %s3713_s30  ;;  %v1913_v9 = vpack.c.bf16 %v1846_v56, %v1845_v8  ;;  %v1117_v14 = vmax.f32 %v4367_v0, 0.0  ;;  %v1118_v7 = vmax.f32 %v1068_v59, 0.0 }
 0x1a1   : > { %2132 = vmatprep.mubr.bf16.mxu1 %v1914_v21  ;;  %v1448_v49 = vrot.slane %v4383_v33, 1  ;;  %v1720_v11 = vrot.slane %v4383_v33, 3  ;;  %v1071_v60 = vadd.f32 %v4037_v55, %v4261_v30  ;;  %v1120_v35 = vmax.f32 %v4375_v54, 0.0 }
 0x1a2   : > { %v1446_v25 = vrot.slane %v4389_v2, 1  ;;  %v1718_v41 = vrot.slane %v4389_v2, 3  ;;  %2133 = vmatmul.mubr.bf16.gmra.mrb[12].mxu1 %v1913_v9  ;;  %v4415_v23 = vmul.f32 %v1301_v32, %v1118_v7  ;;  %v1592_v4 = vrot.slane %v4178_v34, 2 }
 0x1a3   : > { %v3515_v47 = vpop.permute.xlu1 %3514  ;;  %v3520_v10 = vpop.permute.xlu0 %3519  ;;  %v1589_v32 = vsel %vm1566_vm4, %v1586_v18, %v1588_v61  ;;  %v1594_v21 = vrot.slane %v4189_v53, 2  ;;  %v1591_v8 = vsel %vm1566_vm4, %v1588_v61, %v1590_v46 }
 0x1a4   : > { %v3517_v43 = vunpack.i.h.bf16 %v3515_v47  ;;  %v3516_v16 = vunpack.i.l.bf16 %v3515_v47  ;;  %v3522_v0 = vunpack.i.h.bf16 %v3520_v10  ;;  %v3521_v59 = vunpack.i.l.bf16 %v3520_v10 }
 0x1a5   : > { %v1719_v63 = vsel %vm1668_vm2, %v1716_v13, %v1718_v41  ;;  %v1721_v6 = vsel %vm1668_vm2, %v1718_v41, %v1720_v11  ;;  %v1447_v19 = vsel %vm1396_vm3, %v1444_v45, %v1446_v25  ;;  %v1449_v26 = vsel %vm1396_vm3, %v1446_v25, %v1448_v49 }
 0x1a6   : > { %v3593_v20 = vpack.i.bf16 %v1721_v6, %v1719_v63  ;;  %v3598_v15 = vpack.i.bf16 %v1449_v26, %v1447_v19  ;;  %v1881_v55 = vsel %vm1838_vm5, %v1585_v52, %v3516_v16  ;;  %v1882_v30 = vsel %vm1838_vm5, %v1587_v3, %v3517_v43 }
 0x1a7   : > { %v1296_v54 = vpop.permute.xlu1 %1295  ;;  %v1311_v27 = vpop.permute.xlu0 %1310  ;;  %v1916_v17 = vpack.c.bf16 %v1882_v30, %v1881_v55  ;;  %v1847_v13 = vsel %vm1838_vm5, %v4123_v31, %v3521_v59  ;;  %v1848_v28 = vsel %vm1838_vm5, %v4134_v39, %v3522_v0  ;;  %v1452_v56 = vrot.slane %v4415_v23, 1 }
 0x1a8   : > { %v4421_v45 = vmul.f32 %v1296_v54, %v1117_v14  ;;  %3594 = vrot.lane.b32.xlu0 %v3593_v20, %s3713_s30  ;;  %3599 = vrot.lane.b32.xlu1 %v3598_v15, %s3713_s30  ;;  %v1915_v29 = vpack.c.bf16 %v1848_v28, %v1847_v13  ;;  %v1724_v9 = vrot.slane %v4415_v23, 3  ;;  %v1119_v52 = vmax.f32 %v1071_v60, 0.0 }
 0x1a9   : > { %2140 = vmatprep.mubr.bf16.mxu1 %v1916_v17  ;;  %v4437_v3 = vmul.f32 %v1311_v27, %v1120_v35  ;;  %v1596_v54 = vrot.slane %v4197_v62, 2 }
 0x1aa   : > { %v1450_v31 = vrot.slane %v4421_v45, 1  ;;  %v1722_v39 = vrot.slane %v4421_v45, 3  ;;  %2141 = vmatmul.mubr.bf16.gmra.mrb[16].mxu1 %v1915_v29 }
 0x1ab   : > { %v3525_v14 = vpop.permute.xlu1 %3524  ;;  %v3530_v18 = vpop.permute.xlu0 %3529  ;;  %v1728_v27 = vrot.slane %v4437_v3, 3  ;;  %v1456_v28 = vrot.slane %v4437_v3, 1 }
 0x1ac   : > { %v3527_v7 = vunpack.i.h.bf16 %v3525_v14  ;;  %v3526_v25 = vunpack.i.l.bf16 %v3525_v14  ;;  %v3532_v41 = vunpack.i.h.bf16 %v3530_v18  ;;  %v3531_v47 = vunpack.i.l.bf16 %v3530_v18 }
 0x1ad   : > { %v1723_v10 = vsel %vm1668_vm2, %v1720_v11, %v1722_v39  ;;  %v1725_v43 = vsel %vm1668_vm2, %v1722_v39, %v1724_v9  ;;  %v1451_v16 = vsel %vm1396_vm3, %v1448_v49, %v1450_v31  ;;  %v1453_v61 = vsel %vm1396_vm3, %v1450_v31, %v1452_v56  ;;  %v3701_v49 = vld [vmem:[%s4835_s6] ss:$0 sm:$0xff] }
 0x1ae   : > { %v3603_v0 = vpack.i.bf16 %v1725_v43, %v1723_v10  ;;  %v3608_v59 = vpack.i.bf16 %v1453_v61, %v1451_v16  ;;  %v1883_v60 = vsel %vm1838_vm5, %v1589_v32, %v3526_v25  ;;  %v1884_v35 = vsel %vm1838_vm5, %v1591_v8, %v3527_v7 }
 0x1af   : > { %v1306_v63 = vpop.permute.xlu1 %1305  ;;  %v3540_v6 = vpop.permute.xlu0 %3539  ;;  %v1918_v19 = vpack.c.bf16 %v1884_v35, %v1883_v60  ;;  %v1849_v26 = vsel %vm1838_vm5, %v4145_v58, %v3531_v47  ;;  %v1850_v11 = vsel %vm1838_vm5, %v4156_v5, %v3532_v41  ;;  %v1084_v20 = vadd.f32 %v3701_v49, %v4267_v40 }
 0x1b0   : > { %v4453_v15 = vmul.f32 %v1306_v63, %v1119_v52  ;;  %v3541_v55 = vunpack.i.l.bf16 %v3540_v6  ;;  %3604 = vrot.lane.b32.xlu0 %v3603_v0, %s3713_s30  ;;  %3609 = vrot.lane.b32.xlu1 %v3608_v59, %s3713_s30  ;;  %v1917_v30 = vpack.c.bf16 %v1850_v11, %v1849_v26  ;;  %v3542_v58 = vunpack.i.h.bf16 %v3540_v6 }
 0x1b1   : > { %2148 = vmatprep.mubr.bf16.mxu1 %v1918_v19  ;;  %v1593_v5 = vsel %vm1566_vm4, %v1590_v46, %v1592_v4  ;;  %v1079_v13 = vadd.f32 %v3701_v49, %v4265_v37  ;;  %v1122_v32 = vmax.f32 %v1084_v20, 0.0  ;;  %v1595_v31 = vsel %vm1566_vm4, %v1592_v4, %v1594_v21 }
 0x1b2   : > { %v1454_v40 = vrot.slane %v4453_v15, 1  ;;  %v1726_v17 = vrot.slane %v4453_v15, 3  ;;  %2149 = vmatmul.mubr.bf16.gmra.mrb[20].mxu1 %v1917_v30  ;;  %v1851_v46 = vsel %vm1838_vm5, %v4167_v24, %v3541_v55  ;;  %v1852_v25 = vsel %vm1838_vm5, %v4178_v34, %v3542_v58 }
 0x1b3   : > { %v3535_v29 = vpop.permute.xlu1 %3534  ;;  %v1121_v41 = vmax.f32 %v1079_v13, 0.0  ;;  %v1598_v10 = vrot.slane %v4209_v22, 2  ;;  %v1919_v34 = vpack.c.bf16 %v1852_v25, %v1851_v46  ;;  %v1597_v59 = vsel %vm1566_vm4, %v1594_v21, %v1596_v54 }
 0x1b4   : > { %v3537_v39 = vunpack.i.h.bf16 %v3535_v29  ;;  %v3536_v8 = vunpack.i.l.bf16 %v3535_v29  ;;  %v1727_v52 = vsel %vm1668_vm2, %v1724_v9, %v1726_v17  ;;  %v1729_v14 = vsel %vm1668_vm2, %v1726_v17, %v1728_v27 }
 0x1b5   : > { %v3613_v18 = vpack.i.bf16 %v1729_v14, %v1727_v52  ;;  %v1455_v37 = vsel %vm1396_vm3, %v1452_v56, %v1454_v40  ;;  %v1457_v7 = vsel %vm1396_vm3, %v1454_v40, %v1456_v28  ;;  %v1087_v56 = vadd.f32 %v3701_v49, %v4269_v44 }
 0x1b6   : > { %v3618_v47 = vpack.i.bf16 %v1457_v7, %v1455_v37  ;;  %v1885_v4 = vsel %vm1838_vm5, %v1593_v5, %v3536_v8  ;;  %v1886_v24 = vsel %vm1838_vm5, %v1595_v31, %v3537_v39  ;;  %v1600_v60 = vrot.slane %v4221_v36, 2 }
 0x1b7   : > { %v1316_v43 = vpop.permute.xlu1 %1315  ;;  %v1321_v9 = vpop.permute.xlu0 %1320  ;;  %3614 = vrot.lane.b32.xlu0 %v3613_v18, %s3713_s30  ;;  %v1920_v16 = vpack.c.bf16 %v1886_v24, %v1885_v4  ;;  %v1602_v6 = vrot.slane %v4230_v50, 2  ;;  %v1123_v49 = vmax.f32 %v1087_v56, 0.0  ;;  %v1599_v20 = vsel %vm1566_vm4, %v1596_v54, %v1598_v10 }
 0x1b8   : > { %v4482_v61 = vmul.f32 %v1316_v43, %v1121_v41  ;;  %v4484_v0 = vmul.f32 %v1321_v9, %v1122_v32  ;;  %3619 = vrot.lane.b32.xlu1 %v3618_v47, %s3713_s30  ;;  %v1601_v7 = vsel %vm1566_vm4, %v1598_v10, %v1600_v60 }
 0x1b9   : > { %2156 = vmatprep.mubr.bf16.mxu1 %v1920_v16  ;;  %v1603_v25 = vsel %vm1566_vm4, %v1600_v60, %v1602_v6 }
 0x1ba   : > { %v1458_v35 = vrot.slane %v4482_v61, 1  ;;  %v1730_v63 = vrot.slane %v4482_v61, 3  ;;  %v1460_v44 = vrot.slane %v4484_v0, 1  ;;  %2157 = vmatmul.mubr.bf16.gmra.mrb[24].mxu1 %v1919_v34  ;;  %v1732_v19 = vrot.slane %v4484_v0, 3 }
 0x1bb   : > { %v3545_v26 = vpop.permute.xlu1 %3544  ;;  %v3550_v11 = vpop.permute.xlu0 %3549 }
 0x1bc   : > { %v3547_v55 = vunpack.i.h.bf16 %v3545_v26  ;;  %v3546_v21 = vunpack.i.l.bf16 %v3545_v26  ;;  %v3552_v30 = vunpack.i.h.bf16 %v3550_v11  ;;  %v3551_v58 = vunpack.i.l.bf16 %v3550_v11 }
 0x1bd   : > { %v1731_v5 = vsel %vm1668_vm2, %v1728_v27, %v1730_v63  ;;  %v1733_v40 = vsel %vm1668_vm2, %v1730_v63, %v1732_v19  ;;  %v1459_v17 = vsel %vm1396_vm3, %v1456_v28, %v1458_v35  ;;  %v1461_v13 = vsel %vm1396_vm3, %v1458_v35, %v1460_v44 }
 0x1be   : > { %v3623_v29 = vpack.i.bf16 %v1733_v40, %v1731_v5  ;;  %v3628_v32 = vpack.i.bf16 %v1461_v13, %v1459_v17  ;;  %v1887_v31 = vsel %vm1838_vm5, %v1597_v59, %v3546_v21  ;;  %v1888_v46 = vsel %vm1838_vm5, %v1599_v20, %v3547_v55 }
 0x1bf   : > { %v1326_v39 = vpop.permute.xlu1 %1325  ;;  %v3555_v54 = vpop.permute.xlu0 %3554  ;;  %v1922_v8 = vpack.c.bf16 %v1888_v46, %v1887_v31  ;;  %v1853_v52 = vsel %vm1838_vm5, %v4189_v53, %v3551_v58  ;;  %v1854_v27 = vsel %vm1838_vm5, %v4197_v62, %v3552_v30  ;;  %v1604_v63 = vrot.slane %v4291_v51, 2 }
 0x1c0   : > { %v4507_v14 = vmul.f32 %v1326_v39, %v1123_v49  ;;  %v3557_v28 = vunpack.i.h.bf16 %v3555_v54  ;;  %v3556_v18 = vunpack.i.l.bf16 %v3555_v54  ;;  %3624 = vrot.lane.b32.xlu0 %v3623_v29, %s3713_s30  ;;  %3629 = vrot.lane.b32.xlu1 %v3628_v32, %s3713_s30  ;;  %v1921_v37 = vpack.c.bf16 %v1854_v27, %v1853_v52 }
 0x1c1   : > { %2164 = vmatprep.mubr.bf16.mxu1 %v1922_v8  ;;  %v1608_v13 = vrot.slane %v4321_v57, 2 }
 0x1c2   : > { %2165 = vmatmul.mubr.bf16.gmra.mrb[28].mxu1 %v1921_v37  ;;  %v1889_v53 = vsel %vm1838_vm5, %v1601_v7, %v3556_v18  ;;  %v1890_v41 = vsel %vm1838_vm5, %v1603_v25, %v3557_v28  ;;  %v1734_v62 = vrot.slane %v4507_v14, 3  ;;  %v1462_v24 = vrot.slane %v4507_v14, 1 }
 0x1c3   : > { %v3560_v47 = vpop.permute.xlu1 %3559  ;;  %v1924_v4 = vpack.c.bf16 %v1890_v41, %v1889_v53  ;;  %v1612_v7 = vrot.slane %v4351_v48, 2  ;;  %v1614_v25 = vrot.slane %v4345_v12, 2 }
 0x1c4   : > { %v3562_v43 = vunpack.i.h.bf16 %v3560_v47  ;;  %v3561_v9 = vunpack.i.l.bf16 %v3560_v47  ;;  %v1735_v16 = vsel %vm1668_vm2, %v1732_v19, %v1734_v62  ;;  %v1463_v10 = vsel %vm1396_vm3, %v1460_v44, %v1462_v24 }
 0x1c5   : > { %2172 = vmatprep.mubr.bf16.mxu1 %v1924_v4  ;;  %v3633_v56 = vpack.i.bf16 %v1734_v62, %v1735_v16  ;;  %v3638_v34 = vpack.i.bf16 %v1462_v24, %v1463_v10  ;;  %v1606_v19 = vrot.slane %v4287_v42, 2 }
 0x1c6   : > { %v1855_v59 = vsel %vm1838_vm5, %v4209_v22, %v3561_v9  ;;  %v1856_v60 = vsel %vm1838_vm5, %v4221_v36, %v3562_v43  ;;  %v1605_v22 = vsel %vm1566_vm4, %v1602_v6, %v1604_v63  ;;  %v1610_v6 = vrot.slane %v4315_v38, 2 }
 0x1c7   : > { %3634 = vrot.lane.b32.xlu0 %v3633_v56, %s3713_s30  ;;  %v1923_v35 = vpack.c.bf16 %v1856_v60, %v1855_v59  ;;  %3639 = vrot.lane.b32.xlu1 %v3638_v34, %s3713_s30  ;;  %v1607_v36 = vsel %vm1566_vm4, %v1604_v63, %v1606_v19  ;;  %v1609_v8 = vsel %vm1566_vm4, %v1606_v19, %v1608_v13  ;;  %v1616_v59 = vrot.slane %v4389_v2, 2 }
 0x1c8   : > { %v1613_v43 = vsel %vm1566_vm4, %v1610_v6, %v1612_v7  ;;  %v1618_v60 = vrot.slane %v4383_v33, 2 }
 0x1ca   : > { %2173 = vmatmul.mubr.bf16.gmra.mrb[32].mxu1 %v1923_v35 }
 0x202   : > { %v3565_v26 = vpop.permute.xlu0 %3564  ;;  %v3570_v11 = vpop.permute.xlu1 %3569 }
 0x203   : > { %v3567_v44 = vunpack.i.h.bf16 %v3565_v26  ;;  %v3566_v49 = vunpack.i.l.bf16 %v3565_v26  ;;  %v3572_v20 = vunpack.i.h.bf16 %v3570_v11  ;;  %v3571_v55 = vunpack.i.l.bf16 %v3570_v11 }
 0x205   : > { %v1891_v21 = vsel %vm1838_vm5, %v1605_v22, %v3566_v49  ;;  %v1892_v30 = vsel %vm1838_vm5, %v1607_v36, %v3567_v44  ;;  %v1857_v58 = vsel %vm1838_vm5, %v4230_v50, %v3571_v55  ;;  %v1858_v5 = vsel %vm1838_vm5, %v4291_v51, %v3572_v20 }
 0x206   : > { %v1926_v40 = vpack.c.bf16 %v1892_v30, %v1891_v21  ;;  %v1925_v17 = vpack.c.bf16 %v1858_v5, %v1857_v58  ;;  %v1611_v50 = vsel %vm1566_vm4, %v1608_v13, %v1610_v6  ;;  %v1617_v49 = vsel %vm1566_vm4, %v1614_v25, %v1616_v59 }
 0x207   : > { %v1620_v30 = vrot.slane %v4421_v45, 2  ;;  %v1622_v58 = vrot.slane %v4415_v23, 2 }
 0x208   : > { %2180 = vmatprep.mubr.bf16.mxu1 %v1926_v40 }
 0x209   : > { %2181 = vmatmul.mubr.bf16.gmra.mrb[36].mxu1 %v1925_v17 }
 0x20a   : > { %v3575_v29 = vpop.permute.xlu0 %3574  ;;  %v3580_v32 = vpop.permute.xlu1 %3579 }
 0x20b   : > { %v3577_v31 = vunpack.i.h.bf16 %v3575_v29  ;;  %v3576_v46 = vunpack.i.l.bf16 %v3575_v29  ;;  %v3582_v39 = vunpack.i.h.bf16 %v3580_v32  ;;  %v3581_v54 = vunpack.i.l.bf16 %v3580_v32 }
 0x20c   : > { %v1621_v32 = vsel %vm1566_vm4, %v1618_v60, %v1620_v30 }
 0x20d   : > { %v1893_v51 = vsel %vm1838_vm5, %v1609_v8, %v3576_v46  ;;  %v1894_v52 = vsel %vm1838_vm5, %v1611_v50, %v3577_v31  ;;  %v1859_v27 = vsel %vm1838_vm5, %v4287_v42, %v3581_v54  ;;  %v1860_v28 = vsel %vm1838_vm5, %v4321_v57, %v3582_v39 }
 0x20e   : > { %v1928_v18 = vpack.c.bf16 %v1894_v52, %v1893_v51  ;;  %v1927_v37 = vpack.c.bf16 %v1860_v28, %v1859_v27  ;;  %v1615_v42 = vsel %vm1566_vm4, %v1612_v7, %v1614_v25  ;;  %v1624_v50 = vrot.slane %v4453_v15, 2 }
 0x20f   : > { %v1626_v51 = vrot.slane %v4437_v3, 2 }
 0x210   : > { %2188 = vmatprep.mubr.bf16.mxu1 %v1928_v18  ;;  %v1625_v25 = vsel %vm1566_vm4, %v1622_v58, %v1624_v50 }
 0x211   : > { %2189 = vmatmul.mubr.bf16.gmra.mrb[40].mxu1 %v1927_v37 }
 0x212   : > { %v3585_v53 = vpop.permute.xlu0 %3584  ;;  %v3590_v41 = vpop.permute.xlu1 %3589 }
 0x213   : > { %v3587_v62 = vunpack.i.h.bf16 %v3585_v53  ;;  %v3586_v47 = vunpack.i.l.bf16 %v3585_v53  ;;  %v3592_v4 = vunpack.i.h.bf16 %v3590_v41  ;;  %v3591_v24 = vunpack.i.l.bf16 %v3590_v41 }
 0x215   : > { %v1895_v57 = vsel %vm1838_vm5, %v1613_v43, %v3586_v47  ;;  %v1896_v9 = vsel %vm1838_vm5, %v1615_v42, %v3587_v62  ;;  %v1861_v16 = vsel %vm1838_vm5, %v4315_v38, %v3591_v24  ;;  %v1862_v56 = vsel %vm1838_vm5, %v4351_v48, %v3592_v4 }
 0x216   : > { %v1930_v10 = vpack.c.bf16 %v1896_v9, %v1895_v57  ;;  %v1929_v34 = vpack.c.bf16 %v1862_v56, %v1861_v16  ;;  %v1619_v38 = vsel %vm1566_vm4, %v1616_v59, %v1618_v60  ;;  %v1628_v24 = vrot.slane %v4482_v61, 2 }
 0x217   : > { %v1630_v43 = vrot.slane %v4484_v0, 2 }
 0x218   : > { %2196 = vmatprep.mubr.bf16.mxu1 %v1930_v10 }
 0x219   : > { %2197 = vmatmul.mubr.bf16.gmra.mrb[44].mxu1 %v1929_v34  ;;  %v1629_v34 = vsel %vm1566_vm4, %v1626_v51, %v1628_v24 }
 0x21a   : > { %v3595_v35 = vpop.permute.xlu0 %3594  ;;  %v3600_v63 = vpop.permute.xlu1 %3599 }
 0x21b   : > { %v3597_v19 = vunpack.i.h.bf16 %v3595_v35  ;;  %v3596_v26 = vunpack.i.l.bf16 %v3595_v35  ;;  %v3602_v11 = vunpack.i.h.bf16 %v3600_v63  ;;  %v3601_v44 = vunpack.i.l.bf16 %v3600_v63 }
 0x21d   : > { %v1897_v48 = vsel %vm1838_vm5, %v1617_v49, %v3596_v26  ;;  %v1898_v20 = vsel %vm1838_vm5, %v1619_v38, %v3597_v19  ;;  %v1863_v55 = vsel %vm1838_vm5, %v4345_v12, %v3601_v44  ;;  %v1864_v22 = vsel %vm1838_vm5, %v4389_v2, %v3602_v11 }
 0x21e   : > { %v1932_v36 = vpack.c.bf16 %v1898_v20, %v1897_v48  ;;  %v1931_v21 = vpack.c.bf16 %v1864_v22, %v1863_v55  ;;  %v1623_v12 = vsel %vm1566_vm4, %v1620_v30, %v1622_v58  ;;  %v1632_v26 = vrot.slane %v4507_v14, 2  ;;  %v4608_v58 = vld [vmem:[%s4837_s8] ss:$0 sm:$0xff] }
 0x220   : > { %2204 = vmatprep.mubr.bf16.mxu1 %v1932_v36  ;;  %v1633_v55 = vsel %vm1566_vm4, %v1630_v43, %v1632_v26 }
 0x221   : > { %2205 = vmatmul.mubr.bf16.gmra.mrb[48].mxu1 %v1931_v21 }
 0x222   : > { %v3605_v5 = vpop.permute.xlu0 %3604  ;;  %v3610_v40 = vpop.permute.xlu1 %3609 }
 0x223   : > { %v3607_v17 = vunpack.i.h.bf16 %v3605_v5  ;;  %v3606_v13 = vunpack.i.l.bf16 %v3605_v5  ;;  %v3612_v6 = vunpack.i.h.bf16 %v3610_v40  ;;  %v3611_v29 = vunpack.i.l.bf16 %v3610_v40 }
 0x225   : > { %v1899_v2 = vsel %vm1838_vm5, %v1621_v32, %v3606_v13  ;;  %v1900_v31 = vsel %vm1838_vm5, %v1623_v12, %v3607_v17  ;;  %v1865_v46 = vsel %vm1838_vm5, %v4383_v33, %v3611_v29  ;;  %v1866_v39 = vsel %vm1838_vm5, %v4421_v45, %v3612_v6 }
 0x226   : > { %v1934_v54 = vpack.c.bf16 %v1900_v31, %v1899_v2  ;;  %v1933_v8 = vpack.c.bf16 %v1866_v39, %v1865_v46  ;;  %v1627_v33 = vsel %vm1566_vm4, %v1624_v50, %v1626_v51 }
 0x228   : > { %2212 = vmatprep.mubr.bf16.mxu1 %v1934_v54 }
 0x229   : > { %2213 = vmatmul.mubr.bf16.gmra.mrb[52].mxu1 %v1933_v8  ;;  %v3615_v52 = vpop.permute.xlu0 %3614 }
 0x22a   : > { %v3617_v27 = vunpack.i.h.bf16 %v3615_v52  ;;  %v3616_v28 = vunpack.i.l.bf16 %v3615_v52  ;;  %v3620_v18 = vpop.permute.xlu1 %3619 }
 0x22b   : > { %v3622_v37 = vunpack.i.h.bf16 %v3620_v18  ;;  %v3621_v7 = vunpack.i.l.bf16 %v3620_v18 }
 0x22c   : > { %v1901_v45 = vsel %vm1838_vm5, %v1625_v25, %v3616_v28  ;;  %v1902_v53 = vsel %vm1838_vm5, %v1627_v33, %v3617_v27 }
 0x22d   : > { %v1936_v41 = vpack.c.bf16 %v1902_v53, %v1901_v45  ;;  %v1867_v62 = vsel %vm1838_vm5, %v4415_v23, %v3621_v7  ;;  %v1868_v47 = vsel %vm1838_vm5, %v4453_v15, %v3622_v37  ;;  %v1631_v23 = vsel %vm1566_vm4, %v1628_v24, %v1630_v43 }
 0x22e   : > { %v1935_v4 = vpack.c.bf16 %v1868_v47, %v1867_v62 }
 0x22f   : > { %2220 = vmatprep.mubr.bf16.mxu1 %v1936_v41 }
 0x231   : > { %2221 = vmatmul.mubr.bf16.gmra.mrb[56].mxu1 %v1935_v4 }
 0x232   : > { %v3625_v42 = vpop.permute.xlu0 %3624  ;;  %v3630_v57 = vpop.permute.xlu1 %3629 }
 0x233   : > { %v3627_v9 = vunpack.i.h.bf16 %v3625_v42  ;;  %v3626_v16 = vunpack.i.l.bf16 %v3625_v42  ;;  %v3632_v56 = vunpack.i.h.bf16 %v3630_v57  ;;  %v3631_v10 = vunpack.i.l.bf16 %v3630_v57 }
 0x235   : > { %v1903_v59 = vsel %vm1838_vm5, %v1629_v34, %v3626_v16  ;;  %v1904_v15 = vsel %vm1838_vm5, %v1631_v23, %v3627_v9  ;;  %v1869_v60 = vsel %vm1838_vm5, %v4437_v3, %v3631_v10  ;;  %v1870_v35 = vsel %vm1838_vm5, %v4482_v61, %v3632_v56 }
 0x236   : > { %v1938_v63 = vpack.c.bf16 %v1904_v15, %v1903_v59  ;;  %v1937_v19 = vpack.c.bf16 %v1870_v35, %v1869_v60 }
 0x238   : > { %2228 = vmatprep.mubr.bf16.mxu1 %v1938_v63 }
 0x239   : > { %2229 = vmatmul.mubr.bf16.gmra.mrb[60].mxu1 %v1937_v19  ;;  %v3635_v11 = vpop.permute.xlu0 %3634  ;;  %v3640_v38 = vpop.permute.xlu1 %3639 }
 0x23a   : > { %v3637_v44 = vunpack.i.h.bf16 %v3635_v11  ;;  %v3636_v49 = vunpack.i.l.bf16 %v3635_v11  ;;  %v3642_v48 = vunpack.i.h.bf16 %v3640_v38  ;;  %v3641_v20 = vunpack.i.l.bf16 %v3640_v38 }
 0x23c   : > { %v1905_v22 = vsel %vm1838_vm5, %v1633_v55, %v3636_v49  ;;  %v1906_v3 = vsel %vm1838_vm5, %v1632_v26, %v3637_v44  ;;  %v1871_v61 = vsel %vm1838_vm5, %v4484_v0, %v3641_v20  ;;  %v1872_v21 = vsel %vm1838_vm5, %v4507_v14, %v3642_v48 }
 0x23d   : > { %v1940_v36 = vpack.c.bf16 %v1906_v3, %v1905_v22  ;;  %v1939_v30 = vpack.c.bf16 %v1872_v21, %v1871_v61 }
 0x23f   : > { %2236 = vmatprep.mubr.bf16.mxu1 %v1940_v36 }
 0x241   : > { %2237 = vmatmul.mubr.bf16.gmra.mrb[64].mxu1 %v1939_v30 }
 0x242   : > { %3404 = vmatprep.mubr.msk.bf16.mxu1 %vm3711_vm0, %v3710_v1 }
 0x250   : > { %v2110_v5 = vpop.f32.mrb[0].mxu1 }
 0x251   : > { %v2111_v40 = vadd.f32 %v4608_v58, %v2110_v5  ;;  %v2112_v17 = vpop.f32.mrb[1].mxu1 }
 0x252   : > { %v2113_v13 = vpop.f32.mrb[2].mxu1 }
 0x253   : > { %v2114_v0 = vadd.f32 %v4608_v58, %v2113_v13  ;;  %v2115_v6 = vpop.f32.mrb[3].mxu1  ;;  %v2245_v14 = vmax.f32 %v2111_v40, 0.0 }
 0x255   : > { %v2246_v29 = vmax.f32 %v2114_v0, 0.0 }
 0x257   : > { %v4612_v32 = vpack.c.bf16 %v2246_v29, %v2245_v14 }
 0x265   : > { %v2118_v12 = vpop.f32.mrb[4].mxu1 }
 0x266   : > { %v2119_v2 = vadd.f32 %v4608_v58, %v2118_v12  ;;  %v2120_v31 = vpop.f32.mrb[5].mxu1 }
 0x267   : > { %v2121_v46 = vpop.f32.mrb[6].mxu1 }
 0x268   : > { %v2122_v39 = vadd.f32 %v4608_v58, %v2121_v46  ;;  %v2123_v54 = vpop.f32.mrb[7].mxu1  ;;  %v2247_v8 = vmax.f32 %v2119_v2, 0.0  ;;  %v2280_v2 = vld [vmem:[%s4864_s22 + $0x8] sm:$0xff] }
 0x269   : > { %2359 = vmatprep.mubr.f32.mxu0 %v2280_v2 }
 0x26a   : > { %v2248_v50 = vmax.f32 %v2122_v39, 0.0 }
 0x26c   : > { %v4616_v51 = vpack.c.bf16 %v2248_v50, %v2247_v8 }
 0x26d   : > { %v2126_v52 = vpop.f32.mrb[8].mxu1 }
 0x26e   : > { %v2127_v27 = vadd.f32 %v4608_v58, %v2126_v52  ;;  %v2128_v28 = vpop.f32.mrb[9].mxu1 }
 0x26f   : > { %v2129_v18 = vpop.f32.mrb[10].mxu1 }
 0x270   : > { %v2130_v37 = vadd.f32 %v4608_v58, %v2129_v18  ;;  %v2131_v7 = vpop.f32.mrb[11].mxu1  ;;  %v2249_v25 = vmax.f32 %v2127_v27, 0.0 }
 0x272   : > { %v2250_v33 = vmax.f32 %v2130_v37, 0.0 }
 0x274   : > { %v4620_v45 = vpack.c.bf16 %v2250_v33, %v2249_v25 }
 0x275   : > { %v2134_v53 = vpop.f32.mrb[12].mxu1 }
 0x276   : > { %v2135_v41 = vadd.f32 %v4608_v58, %v2134_v53  ;;  %v2136_v62 = vpop.f32.mrb[13].mxu1 }
 0x277   : > { %v2137_v47 = vpop.f32.mrb[14].mxu1 }
 0x278   : > { %v2138_v4 = vadd.f32 %v4608_v58, %v2137_v47  ;;  %v2139_v24 = vpop.f32.mrb[15].mxu1  ;;  %v2251_v43 = vmax.f32 %v2135_v41, 0.0 }
 0x27a   : > { %v2252_v42 = vmax.f32 %v2138_v4, 0.0 }
 0x27c   : > { %v4624_v57 = vpack.c.bf16 %v2252_v42, %v2251_v43 }
 0x27d   : > { %v2142_v9 = vpop.f32.mrb[16].mxu1 }
 0x27e   : > { %v2143_v16 = vadd.f32 %v4608_v58, %v2142_v9  ;;  %v2144_v56 = vpop.f32.mrb[17].mxu1 }
 0x27f   : > { %v2145_v10 = vpop.f32.mrb[18].mxu1 }
 0x280   : > { %v2146_v34 = vadd.f32 %v4608_v58, %v2145_v10  ;;  %v2147_v23 = vpop.f32.mrb[19].mxu1  ;;  %v2253_v59 = vmax.f32 %v2143_v16, 0.0 }
 0x282   : > { %v2254_v15 = vmax.f32 %v2146_v34, 0.0 }
 0x284   : > { %v4628_v60 = vpack.c.bf16 %v2254_v15, %v2253_v59 }
 0x285   : > { %v2150_v35 = vpop.f32.mrb[20].mxu1 }
 0x286   : > { %v2151_v63 = vadd.f32 %v4608_v58, %v2150_v35  ;;  %v2152_v19 = vpop.f32.mrb[21].mxu1 }
 0x287   : > { %v2153_v26 = vpop.f32.mrb[22].mxu1 }
 0x288   : > { %v2154_v11 = vadd.f32 %v4608_v58, %v2153_v26  ;;  %v2155_v44 = vpop.f32.mrb[23].mxu1  ;;  %v2255_v49 = vmax.f32 %v2151_v63, 0.0 }
 0x28a   : > { %v2256_v38 = vmax.f32 %v2154_v11, 0.0 }
 0x28c   : > { %v4632_v48 = vpack.c.bf16 %v2256_v38, %v2255_v49 }
 0x28d   : > { %v2158_v20 = vpop.f32.mrb[24].mxu1 }
 0x28e   : > { %v2159_v55 = vadd.f32 %v4608_v58, %v2158_v20  ;;  %v2160_v22 = vpop.f32.mrb[25].mxu1 }
 0x28f   : > { %v2161_v3 = vpop.f32.mrb[26].mxu1 }
 0x290   : > { %v2162_v36 = vadd.f32 %v4608_v58, %v2161_v3  ;;  %v2163_v61 = vpop.f32.mrb[27].mxu1  ;;  %v2257_v21 = vmax.f32 %v2159_v55, 0.0 }
 0x292   : > { %v2258_v30 = vmax.f32 %v2162_v36, 0.0 }
 0x294   : > { %v4636_v5 = vpack.c.bf16 %v2258_v30, %v2257_v21 }
 0x295   : > { %v2166_v40 = vpop.f32.mrb[28].mxu1 }
 0x296   : > { %v2167_v17 = vadd.f32 %v4608_v58, %v2166_v40  ;;  %v2168_v13 = vpop.f32.mrb[29].mxu1 }
 0x297   : > { %v2169_v0 = vpop.f32.mrb[30].mxu1 }
 0x298   : > { %v2170_v6 = vadd.f32 %v4608_v58, %v2169_v0  ;;  %v2171_v14 = vpop.f32.mrb[31].mxu1  ;;  %v2259_v29 = vmax.f32 %v2167_v17, 0.0 }
 0x29a   : > { %v2260_v12 = vmax.f32 %v2170_v6, 0.0 }
 0x29c   : > { %v4643_v31 = vpack.c.bf16 %v2260_v12, %v2259_v29 }
 0x29d   : > { %v2174_v46 = vpop.f32.mrb[32].mxu1 }
 0x29e   : > { %v2175_v39 = vadd.f32 %v4608_v58, %v2174_v46  ;;  %v2176_v54 = vpop.f32.mrb[33].mxu1 }
 0x29f   : > { %v2177_v8 = vpop.f32.mrb[34].mxu1 }
 0x2a0   : > { %v2178_v50 = vadd.f32 %v4608_v58, %v2177_v8  ;;  %v2179_v52 = vpop.f32.mrb[35].mxu1  ;;  %v2261_v27 = vmax.f32 %v2175_v39, 0.0 }
 0x2a2   : > { %v2262_v28 = vmax.f32 %v2178_v50, 0.0 }
 0x2a4   : > { %v3420_v18 = vpack.c.bf16 %v2262_v28, %v2261_v27 }
 0x2a6   : > { %3421 = vmatprep.subr.bf16.mxu0 %v3420_v18 }
 0x2a7   : > { %3423 = vmatpush3.bf16.msra.mxu0 %v4612_v32 }
 0x2dc   : > { %v2182_v37 = vpop.f32.mrb[36].mxu1 }
 0x2dd   : > { %v2183_v7 = vadd.f32 %v4608_v58, %v2182_v37  ;;  %v2184_v25 = vpop.f32.mrb[37].mxu1 }
 0x2de   : > { %v2185_v33 = vpop.f32.mrb[38].mxu1 }
 0x2df   : > { %v2186_v53 = vadd.f32 %v4608_v58, %v2185_v33  ;;  %v2187_v41 = vpop.f32.mrb[39].mxu1  ;;  %v2263_v62 = vmax.f32 %v2183_v7, 0.0 }
 0x2e1   : > { %v2264_v47 = vmax.f32 %v2186_v53, 0.0 }
 0x2e3   : > { %v3424_v4 = vpack.c.bf16 %v2264_v47, %v2263_v62 }
 0x2e4   : > { %v2190_v24 = vpop.f32.mrb[40].mxu1 }
 0x2e5   : > { %v2191_v43 = vadd.f32 %v4608_v58, %v2190_v24  ;;  %v2192_v42 = vpop.f32.mrb[41].mxu1  ;;  %3425 = vmatprep.subr.bf16.mxu0 %v3424_v4  ;;  %v2283_v24 = vld [vmem:[%s4864_s22 + $0x20] sm:$0xff] }
 0x2e6   : > { %v2193_v9 = vpop.f32.mrb[42].mxu1  ;;  %3427 = vmatpush3.bf16.msra.mxu0 %v4616_v51 }
 0x2e7   : > { %v2194_v32 = vadd.f32 %v4608_v58, %v2193_v9  ;;  %v2195_v16 = vpop.f32.mrb[43].mxu1  ;;  %v2265_v56 = vmax.f32 %v2191_v43, 0.0  ;;  %v2281_v9 = vld [vmem:[%s4864_s22 + $0x10] sm:$0xff] }
 0x2e8   : > { %v2284_v16 = vld [vmem:[%s4864_s22 + $0x28] sm:$0xff] }
 0x2e9   : > { %v2266_v10 = vmax.f32 %v2194_v32, 0.0  ;;  %v2448_v32 = vld [vmem:[%s4838_s9] sm:$0xf] }
 0x2eb   : > { %v3428_v34 = vpack.c.bf16 %v2266_v10, %v2265_v56  ;;  %v2445_v56 = vld [vmem:[%s698_s26] sm:$0xff]  ;;  %v2446_v10 = vld [vmem:[%s698_s26 + $0x8] sm:$0xff]  ;;  %s704_s26 = scalar_lea.vmem %s4867_s24, %s4679_s25 }
 0x2ec   : > { %v2198_v23 = vpop.f32.mrb[44].mxu1 }
 0x2ed   : > { %v2199_v59 = vadd.f32 %v4608_v58, %v2198_v23  ;;  %v2200_v15 = vpop.f32.mrb[45].mxu1  ;;  %3429 = vmatprep.subr.bf16.mxu0 %v3428_v34  ;;  %v2462_v34 = vsel %vm2460_vm9, %v2448_v32, 0  ;;  %v2447_v23 = vpack.c.bf16 %v2446_v10, %v2445_v56 }
 0x2ee   : > { %v2201_v35 = vpop.f32.mrb[46].mxu1  ;;  %3431 = vmatpush3.bf16.msra.mxu0 %v4620_v45  ;;  %v3680_v15 = vld [vmem:[%s4840_s11 + $0x8] sm:$0xff]  }
 0x2ef   : > { %v2202_v63 = vadd.f32 %v4608_v58, %v2201_v35  ;;  %v2203_v19 = vpop.f32.mrb[47].mxu1  ;;  %v2267_v26 = vmax.f32 %v2199_v59, 0.0  ;;  %v3679_v59 = vld [vmem:[%s4840_s11] sm:$0xff]  }
 0x2f1   : > { %v2268_v11 = vmax.f32 %v2202_v63, 0.0 }
 0x2f3   : > { %v3432_v51 = vpack.c.bf16 %v2268_v11, %v2267_v26 }
 0x2f4   : > { %v2206_v44 = vpop.f32.mrb[48].mxu1 }
 0x2f5   : > { %v2207_v49 = vadd.f32 %v4608_v58, %v2206_v44  ;;  %v2208_v38 = vpop.f32.mrb[49].mxu1  ;;  %3433 = vmatprep.subr.bf16.mxu0 %v3432_v51 }
 0x2f6   : > { %v2209_v20 = vpop.f32.mrb[50].mxu1  ;;  %3435 = vmatpush3.bf16.msra.mxu0 %v4624_v57 }
 0x2f7   : > { %v2210_v55 = vadd.f32 %v4608_v58, %v2209_v20  ;;  %v2211_v22 = vpop.f32.mrb[51].mxu1  ;;  %v2269_v3 = vmax.f32 %v2207_v49, 0.0 }
 0x2f9   : > { %v2270_v36 = vmax.f32 %v2210_v55, 0.0  ;;  %v3144_v55 = vld [vmem:[%s4839_s10] ss:$0 sm:$0xff] }
 0x2fb   : > { %v3436_v45 = vpack.c.bf16 %v2270_v36, %v2269_v3 }
 0x2fc   : > { %v2214_v61 = vpop.f32.mrb[52].mxu1 }
 0x2fd   : > { %v2215_v21 = vadd.f32 %v4608_v58, %v2214_v61  ;;  %v2216_v30 = vpop.f32.mrb[53].mxu1  ;;  %3437 = vmatprep.subr.bf16.mxu0 %v3436_v45 }
 0x2fe   : > { %v2217_v40 = vpop.f32.mrb[54].mxu1  ;;  %3439 = vmatpush3.bf16.msra.mxu0 %v4628_v60 }
 0x2ff   : > { %v2218_v17 = vadd.f32 %v4608_v58, %v2217_v40  ;;  %v2219_v13 = vpop.f32.mrb[55].mxu1  ;;  %v2271_v0 = vmax.f32 %v2215_v21, 0.0 }
 0x300   : > { %v3681_v13 = vld [vmem:[%s4843_s14] sm:$0xff]  }
 0x301   : > { %v2272_v6 = vmax.f32 %v2218_v17, 0.0 }
 0x303   : > { %v3440_v57 = vpack.c.bf16 %v2272_v6, %v2271_v0  ;;  %v3682_v6 = vld [vmem:[%s4843_s14 + $0x8] sm:$0xff]  }
 0x304   : > { %v2222_v14 = vpop.f32.mrb[56].mxu1 }
 0x305   : > { %v2223_v29 = vadd.f32 %v4608_v58, %v2222_v14  ;;  %v2224_v12 = vpop.f32.mrb[57].mxu1  ;;  %3441 = vmatprep.subr.bf16.mxu0 %v3440_v57  ;;  %v3683_v57 = vld [vmem:[%s4843_s14 + $0x10] sm:$0xff]   ;;  %v3684_v14 = vld [vmem:[%s4843_s14 + $0x18] sm:$0xff]  }
 0x306   : > { %v2225_v2 = vpop.f32.mrb[58].mxu1  ;;  %3443 = vmatpush3.bf16.msra.mxu0 %v4632_v48  ;;  %v3686_v12 = vld [vmem:[%s4842_s13 + $0x8] sm:$0xff]  }
 0x307   : > { %v2226_v46 = vadd.f32 %v4608_v58, %v2225_v2  ;;  %v2227_v39 = vpop.f32.mrb[59].mxu1  ;;  %v2273_v54 = vmax.f32 %v2223_v29, 0.0  ;;  %v3685_v29 = vld [vmem:[%s4842_s13] sm:$0xff]   ;;  %v3687_v2 = vld [vmem:[%s4842_s13 + $0x10] sm:$0xff]  }
 0x308   : > { %v3689_v39 = vld [vmem:[%s4845_s16] sm:$0xff]  }
 0x309   : > { %v2274_v60 = vmax.f32 %v2226_v46, 0.0  ;;  %v3688_v46 = vld [vmem:[%s4842_s13 + $0x18] sm:$0xff]   ;;  %3389 = vmatpush3.bf16.msra.mxu1 %v3689_v39 }
 0x30a   : > { %3390 = vmatprep.subr.bf16.mxu1 %v3710_v1 }
 0x30b   : > { %v3444_v8 = vpack.c.bf16 %v2274_v60, %v2273_v54  ;;  %v3690_v54 = vld [vmem:[%s4845_s16 + $0x8] sm:$0xff]   ;;  %v3691_v60 = vld [vmem:[%s4845_s16 + $0x10] sm:$0xff]  }
 0x30c   : > { %v2230_v50 = vpop.f32.mrb[60].mxu1 }
 0x30d   : > { %v2231_v52 = vadd.f32 %v4608_v58, %v2230_v50  ;;  %v2232_v27 = vpop.f32.mrb[61].mxu1  ;;  %3445 = vmatprep.subr.bf16.mxu0 %v3444_v8  ;;  %3391 = vmatpush3.bf16.msra.mxu1 %v3690_v54  ;;  %v3692_v8 = vld [vmem:[%s4845_s16 + $0x18] sm:$0xff]   ;;  %v3693_v50 = vld [vmem:[%s4845_s16 + $0x20] sm:$0xff]  }
 0x30e   : > { %v2233_v28 = vpop.f32.mrb[62].mxu1  ;;  %3447 = vmatpush3.bf16.msra.mxu0 %v4636_v5  ;;  %v2279_v5 = vld [vmem:[%s4864_s22] sm:$0xff]  ;;  %3392 = vmatprep.subr.bf16.mxu1 %v3710_v1 }
 0x30f   : > { %v2234_v18 = vadd.f32 %v4608_v58, %v2233_v28  ;;  %v2235_v37 = vpop.f32.mrb[63].mxu1  ;;  %v2275_v48 = vmax.f32 %v2231_v52, 0.0  ;;  %v3146_v52 = vld [vmem:[%s4841_s12] ss:$0 sm:$0xff] }
 0x311   : > { %v2276_v7 = vmax.f32 %v2234_v18, 0.0  ;;  %3393 = vmatpush3.bf16.msra.mxu1 %v3691_v60 }
 0x312   : > { %3394 = vmatprep.subr.bf16.mxu1 %v3710_v1 }
 0x313   : > { %v3448_v25 = vpack.c.bf16 %v2276_v7, %v2275_v48 }
 0x314   : > { %v2238_v33 = vpop.f32.mrb[64].mxu1 }
 0x315   : > { %v2239_v53 = vadd.f32 %v4608_v58, %v2238_v33  ;;  %v2240_v41 = vpop.f32.mrb[65].mxu1  ;;  %3449 = vmatprep.subr.bf16.mxu0 %v3448_v25  ;;  %3395 = vmatpush3.bf16.msra.mxu1 %v3692_v8 }
 0x316   : > { %v2241_v62 = vpop.f32.mrb[66].mxu1  ;;  %3451 = vmatpush3.bf16.msra.mxu0 %v4643_v31  ;;  %v2282_v31 = vld [vmem:[%s4864_s22 + $0x18] sm:$0xff]  ;;  %3396 = vmatprep.subr.bf16.mxu1 %v3710_v1 }
 0x317   : > { %v2242_v47 = vadd.f32 %v4608_v58, %v2241_v62  ;;  %v2243_v4 = vpop.f32.mrb[67].mxu1  ;;  %v2277_v43 = vmax.f32 %v2239_v53, 0.0 }
 0x318   : > { %v3694_v4 = vld [vmem:[%s4845_s16 + $0x28] sm:$0xff]  }
 0x319   : > { %v2278_v42 = vmax.f32 %v2242_v47, 0.0  ;;  %2360 = vmatmul.mubr.f32.vlgmr.msra.gmra.mrb[68].mxu0 %v2279_v5  ;;  %3397 = vmatpush3.bf16.msra.mxu1 %v3693_v50 }
 0x31a   : > { %2364 = vmatprep.mubr.f32.mxu0 %v2283_v24  ;;  %3398 = vmatprep.subr.bf16.mxu1 %v3710_v1  ;;  %v3695_v24 = vld [vmem:[%s4845_s16 + $0x30] sm:$0xff]  }
 0x31b   : > { %v3452_v58 = vpack.c.bf16 %v2278_v42, %v2277_v43  ;;  %v3696_v43 = vld [vmem:[%s4845_s16 + $0x38] sm:$0xff]   ;;  %v3697_v42 = vld [vmem:[%s4847_s18] sm:$0xff]  }
 0x31d   : > { %2365 = vmatmul.mubr.f32.gmra.mrb[70].mxu0 %v2282_v31  ;;  %3454 = vmatprep.subr.msk.bf16.mxu0 %vm3453_vm7, %v3452_v58  ;;  %v3698_v31 = vld [vmem:[%s4847_s18 + $0x8] sm:$0xff]  }
 0x31e   : > { %3457 = vmatpush3.bf16.msk.msra.mxu0 %vm3453_vm7, %v3452_v58  ;;  %3347 = vmatprep.mubr.msk.f32.mxu0 %vm2285_vm8, %v2281_v9  ;;  %v3160_v9 = vld [vmem:[%s4844_s15] ss:$0 sm:$0xff] }
 0x31f   : > { %3350 = vmatprep.subr.bf16.mxu0 %v3710_v1  ;;  %3399 = vmatpush3.bf16.msra.mxu1 %v3694_v4 }
 0x320   : > { %3400 = vmatprep.subr.bf16.mxu1 %v3710_v1 }
 0x321   : > { %3348 = vmatmul.mubr.msk.f32.vlgmr.msra.gmra.mrb[72].mxu0 %vm2285_vm8, %v2284_v16 }
 0x322   : > { %3351 = vmatpush3.bf16.msra.mxu0 %v2462_v34  ;;  %3352 = vmatprep.mubr.msk.bf16.mxu0 %vm3711_vm0, %v3710_v1 }
 0x323   : > { %3356 = vmatprep.subr.bf16.mxu0 %v3710_v1  ;;  %3401 = vmatpush3.bf16.msra.mxu1 %v3695_v24 }
 0x324   : > { %3402 = vmatprep.subr.bf16.mxu1 %v3710_v1 }
 0x325   : > { %3353 = vmatmul.mubr.msk.bf16.vlgmr.msra.gmra.mrb[76].mxu0 %vm2456_vm10, %v2447_v23 }
 0x326   : > { %3360 = vmatprep.mubr.msk.bf16.mxu0 %vm3711_vm0, %v3710_v1  ;;  %3357 = vmatpush3.bf16.msra.mxu0 %v3679_v59 }
 0x327   : > { %3358 = vmatprep.subr.bf16.mxu0 %v3710_v1  ;;  %3403 = vmatpush3.bf16.msra.mxu1 %v3696_v43 }
 0x32a   : > { %3359 = vmatpush3.bf16.msra.mxu0 %v3680_v15 }
 0x32b   : > { %3364 = vmatprep.subr.bf16.mxu0 %v3710_v1 }
 0x3ec   : > { %v3230_v35 = vpop.f32.mrb[68].mxu0 }
 0x3ed   : > { %v3231_v63 = vpop.f32.mrb[69].mxu0 }
 0x3ee   : > { %v3232_v19 = vadd.f32 %v3231_v63, %v3230_v35 }
 0x3f0   : > { %v3233_v26 = vpop.f32.mrb[70].mxu0 }
 0x3f1   : > { %v3234_v11 = vpop.f32.mrb[71].mxu0 }
 0x3f2   : > { %v3235_v51 = vadd.f32 %v3234_v11, %v3233_v26  ;;  %v3700_v26 = vld [vmem:[%s4847_s18 + $0x18] sm:$0xff]   ;;  %v3161_v11 = vld [vmem:[%s4846_s17] ss:$0 sm:$0xff] }
 0x3f4   : > { %v3349_v44 = vpop.f32.mrb[72].mxu0 }
 0x3f5   : > { %v2442_v49 = vadd.f32 %v3349_v44, %v3235_v51  ;;  %v2436_v38 = vpop.f32.mrb[73].mxu0 }
 0x3f6   : > { %v2437_v20 = vadd.f32 %v3232_v19, %v2436_v38  ;;  %v3699_v19 = vld [vmem:[%s4847_s18 + $0x10] sm:$0xff]  }
 0x3f8   : > { %v2587_v22 = vpack.c.bf16 %v2442_v49, %v2437_v20  ;;  %v2498_v3 = vpop.f32.mrb[76].mxu0 }
 0x3f9   : > { %v2499_v36 = vadd.f32 %v3144_v55, %v2498_v3  ;;  %v3354_v45 = vpop.f32.mrb[77].mxu0 }
 0x3fa   : > { %v2501_v61 = vpop.f32.mrb[78].mxu0 }
 0x3fb   : > { %v2502_v21 = vadd.f32 %v3144_v55, %v2501_v61  ;;  %v3355_v30 = vpop.f32.mrb[79].mxu0  ;;  %v2505_v40 = vmax.f32 %v2499_v36, 0.0  ;;  %v2945_v61 = vld [vmem:[%s704_s26] sm:$0xff] }
 0x3fd   : > { %v2506_v17 = vmax.f32 %v2502_v21, 0.0 }
 0x3ff   : > { %v2507_v0 = vpack.c.bf16 %v2506_v17, %v2505_v40  ;;  %v2946_v17 = vld [vmem:[%s704_s26 + $0x8] sm:$0xff] }
 0x401   : > { %3361 = vmatmul.mubr.msk.bf16.vlgmr.msra.gmra.mrb[80].mxu0 %vm2531_vm11, %v2507_v0 }
 0x402   : > { %3365 = vmatpush3.bf16.msra.mxu0 %v3681_v13  ;;  %3372 = vmatprep.mubr.msk.bf16.mxu0 %vm3711_vm0, %v3710_v1 }
 0x403   : > { %3366 = vmatprep.subr.bf16.mxu0 %v3710_v1 }
 0x406   : > { %3367 = vmatpush3.bf16.msra.mxu0 %v3682_v6 }
 0x407   : > { %3368 = vmatprep.subr.bf16.mxu0 %v3710_v1 }
 0x40a   : > { %3369 = vmatpush3.bf16.msra.mxu0 %v3683_v57 }
 0x40b   : > { %3370 = vmatprep.subr.bf16.mxu0 %v3710_v1 }
 0x40e   : > { %3371 = vmatpush3.bf16.msra.mxu0 %v3684_v14 }
 0x40f   : > { %3376 = vmatprep.subr.bf16.mxu0 %v3710_v1 }
 0x411   : > { %3373 = vmatmul.mubr.msk.bf16.vlgmr.msra.gmra.mrb[84].mxu0 %vm1838_vm5, %v2587_v22 }
 0x412   : > { %3377 = vmatpush3.bf16.msra.mxu0 %v3685_v29  ;;  %3384 = vmatprep.mubr.msk.bf16.mxu0 %vm3711_vm0, %v3710_v1 }
 0x413   : > { %3378 = vmatprep.subr.bf16.mxu0 %v3710_v1 }
 0x416   : > { %3379 = vmatpush3.bf16.msra.mxu0 %v3686_v12 }
 0x417   : > { %3380 = vmatprep.subr.bf16.mxu0 %v3710_v1 }
 0x41a   : > { %3381 = vmatpush3.bf16.msra.mxu0 %v3687_v2 }
 0x41b   : > { %3382 = vmatprep.subr.bf16.mxu0 %v3710_v1 }
 0x41e   : > { %3383 = vmatpush3.bf16.msra.mxu0 %v3688_v46 }
 0x41f   : > { %3408 = vmatprep.subr.bf16.mxu0 %v3710_v1 }
 0x4d4   : > { %v2569_v27 = vpop.f32.mrb[80].mxu0 }
 0x4d5   : > { %v2570_v28 = vadd.f32 %v3146_v52, %v2569_v27  ;;  %v3362_v18 = vpop.f32.mrb[81].mxu0 }
 0x4d6   : > { %v2572_v37 = vpop.f32.mrb[82].mxu0 }
 0x4d7   : > { %v2573_v48 = vadd.f32 %v3146_v52, %v2572_v37  ;;  %v3363_v7 = vpop.f32.mrb[83].mxu0  ;;  %v2576_v25 = vmax.f32 %v2570_v28, 0.0 }
 0x4d9   : > { %v2577_v33 = vmax.f32 %v2573_v48, 0.0 }
 0x4db   : > { %v2578_v53 = vpack.c.bf16 %v2577_v33, %v2576_v25 }
 0x4dd   : > { %3385 = vmatmul.mubr.msk.bf16.vlgmr.msra.gmra.mrb[88].mxu0 %vm1838_vm5, %v2578_v53 }
 0x4de   : > { %3416 = vmatprep.mubr.msk.bf16.mxu0 %vm3711_vm0, %v3710_v1  ;;  %3409 = vmatpush3.bf16.msra.mxu0 %v3697_v42 }
 0x4df   : > { %3410 = vmatprep.subr.bf16.mxu0 %v3710_v1 }
 0x4e2   : > { %3411 = vmatpush3.bf16.msra.mxu0 %v3698_v31 }
 0x4e3   : > { %3412 = vmatprep.subr.bf16.mxu0 %v3710_v1 }
 0x4e4   : > { %v2657_v41 = vpop.f32.mrb[84].mxu0 }
 0x4e5   : > { %v3374_v62 = vpop.f32.mrb[85].mxu0 }
 0x4e6   : > { %v2660_v5 = vpop.f32.mrb[86].mxu0  ;;  %3413 = vmatpush3.bf16.msra.mxu0 %v3699_v19 }
 0x4e7   : > { %v3375_v47 = vpop.f32.mrb[87].mxu0  ;;  %3414 = vmatprep.subr.bf16.mxu0 %v3710_v1  ;;  %v3170_v1 = vld [vmem:[%s4848_s19] ss:$0 sm:$0xff] }
 0x4ea   : > { %3415 = vmatpush3.bf16.msra.mxu0 %v3700_v26 }
 0x5b0   : > { %v2725_v58 = vpop.f32.mrb[88].mxu0 }
 0x5b1   : > { %v2726_v32 = vadd.f32 %v2725_v58, %v2657_v41  ;;  %v3386_v16 = vpop.f32.mrb[89].mxu0 }
 0x5b2   : > { %v2728_v56 = vpop.f32.mrb[90].mxu0 }
 0x5b3   : > { %v2739_v10 = vadd.f32 %v3160_v9, %v2726_v32  ;;  %v2729_v34 = vadd.f32 %v2728_v56, %v2660_v5  ;;  %v3387_v23 = vpop.f32.mrb[91].mxu0 }
 0x5b5   : > { %v2740_v59 = vadd.f32 %v3160_v9, %v2729_v34  ;;  %v2741_v15 = vmax.f32 %v2739_v10, 0.0 }
 0x5b7   : > { %v2742_v35 = vmax.f32 %v2740_v59, 0.0 }
 0x5b9   : > { %v2743_v63 = vpack.c.bf16 %v2742_v35, %v2741_v15 }
 0x5bb   : > { %3405 = vmatmul.mubr.bf16.vlgmr.msra.gmra.mrb[68].mxu1 %v2743_v63 }
 0x68e   : > { %v2849_v51 = vpop.f32.mrb[68].mxu1 }
 0x68f   : > { %v2850_v44 = vadd.f32 %v3161_v11, %v2849_v51  ;;  %v3406_v49 = vpop.f32.mrb[69].mxu1 }
 0x690   : > { %v2852_v38 = vpop.f32.mrb[70].mxu1 }
 0x691   : > { %v2853_v20 = vadd.f32 %v3161_v11, %v2852_v38  ;;  %v3407_v55 = vpop.f32.mrb[71].mxu1  ;;  %v2856_v22 = vmax.f32 %v2850_v44, 0.0 }
 0x693   : > { %v2857_v3 = vmax.f32 %v2853_v20, 0.0 }
 0x695   : > { %v2858_v36 = vpack.c.bf16 %v2857_v3, %v2856_v22 }
 0x697   : > { %3417 = vmatmul.mubr.msk.bf16.vlgmr.msra.gmra.mrb[92].mxu0 %vm1838_vm5, %v2858_v36 }
 0x76a   : > { %v2935_v45 = vpop.f32.mrb[92].mxu0 }
 0x76b   : > { %v2936_v21 = vadd.f32 %v3170_v1, %v2935_v45  ;;  %v3418_v30 = vpop.f32.mrb[93].mxu0 }
 0x76c   : > { %v2938_v40 = vpop.f32.mrb[94].mxu0 }
 0x76d   : > { %v2939_v13 = vadd.f32 %v3170_v1, %v2938_v40  ;;  %v3419_v0 = vpop.f32.mrb[95].mxu0  ;;  %v2947_v6 = vmul.f32 %v2945_v61, %v2936_v21  ;;  %2943 = vst.msk [vmem:[%s710_s29] sm:$0xff] %vm2942_vm12, %v2936_v21 }
 0x76f   : > { %v2949_v57 = vsel %vm2942_vm12, %v2947_v6, 0.0  ;;  %2944 = vst.msk [vmem:[%s710_s29 + $0x8] sm:$0xff] %vm2942_vm12, %v2939_v13  ;;  %v2948_v14 = vmul.f32 %v2946_v17, %v2939_v13 }
 0x770   : > { %2950 = vadd.xlane.f32.xlu0 %v2949_v57 }
 0x771   : > { %v2952_v29 = vsel %vm2942_vm12, %v2948_v14, 0.0 }
 0x772   : > { %2953 = vadd.xlane.f32.xlu1 %v2952_v29 }
 0x7fd   : > { %v2951_v12 = vpop.xlane.xlu0 %2950 }
 0x7fe   : > { %2956 = vst.msk [vmem:[%s716_s1] sm:$0xff] %vm2955_vm13, %v2951_v12 }
 0x7ff   : > { %v2954_v2 = vpop.xlane.xlu1 %2953 }
 0x800   : > { %2957 = vst.msk [vmem:[%s716_s1 + $0x8] sm:$0xff] %vm2955_vm13, %v2954_v2 }
 0x801 PF: > { %s32_s2 = sadd.s32 1, %s3708_s2  }
 0x802   : > { %p29_p5 = scmp.ge.s32.totalorder %s32_s2, 6  }
 0x804   :  { %31 = sbr.rel (!%p29_p5) target bundleno = 7 (0x7), region = 148 }

</bundles_post_ra>
